<compile_context>
chip_gen: v7x
topology: tpu7x:2x2x1
jax: 0.10.0
libtpu: 0.0.40
codegen_flags: <defaults>
</compile_context>

<pallas_src>
import math

import jax
import jax.numpy as jnp
from jax.experimental import pallas as pl
from jax.experimental.pallas import tpu as pltpu


# ----------------------------------------------------------------------------
# Pallas kernel factory: full residual attention block for one batch element.
# ----------------------------------------------------------------------------
def make_block_kernel(num_heads: int, head_dim: int, *, has_mask: bool,
                      store_attn: bool, compute_dtype=jnp.bfloat16):
    cd = compute_dtype

    def kernel(*refs):
        n_in = 14 if has_mask else 13
        in_refs, out_refs = refs[:n_in], refs[n_in:]
        if has_mask:
            (x_ref, mask_ref, w_in_ref, b_in_ref, w_out_ref, b_out_ref,
             g1_ref, be1_ref, g2_ref, be2_ref,
             w_fc_ref, b_fc_ref, w_pr_ref, b_pr_ref) = in_refs
        else:
            (x_ref, w_in_ref, b_in_ref, w_out_ref, b_out_ref,
             g1_ref, be1_ref, g2_ref, be2_ref,
             w_fc_ref, b_fc_ref, w_pr_ref, b_pr_ref) = in_refs
            mask_ref = None
        if store_attn:
            y_ref, attn_ref = out_refs
        else:
            (y_ref,) = out_refs

        x = x_ref[0]                                           # (L, C) f32
        L = x.shape[0]

        def layer_norm(v, gamma, beta):                        # f32 math
            mu = jnp.mean(v, axis=-1, keepdims=True)
            var = jnp.mean((v - mu) ** 2, axis=-1, keepdims=True)
            return (v - mu) * jax.lax.rsqrt(var + 1e-5) * gamma + beta

        # ---- ln_1 + fused QKV projection (softmax scale pre-folded into W_q)
        h1 = layer_norm(x, g1_ref[...], be1_ref[...])
        qkv = jnp.dot(h1.astype(cd), w_in_ref[...],
                      preferred_element_type=jnp.float32) + b_in_ref[...]

        # ---- head split: one minor-dim split + one layout-aware transpose ---
        # (replaces 2H lane-dim slices + stack; leading-dim slices are free)
        qkv_h = pltpu.einshape("lhd->hld",
                               qkv.reshape(L, 3 * num_heads, head_dim))
        q = qkv_h[:num_heads]                                  # (H, L, hd) f32
        k = qkv_h[num_heads:2 * num_heads]
        v = qkv_h[2 * num_heads:]

        # ---- batched scaled dot-product attention (heads = batch dim) -------
        # NT layout 'hqd,hkd->hqk': no in-kernel K transpose.
        s = jnp.einsum("hqd,hkd->hqk", q.astype(cd), k.astype(cd),
                       preferred_element_type=jnp.float32)     # (H, L, L) f32
        if has_mask:
            # NOTE: a fully -inf row would produce NaN here, matching torch
            # softmax semantics for that (degenerate) case.
            s = s + mask_ref[...]
        s = s - jnp.max(s, axis=-1, keepdims=True)
        p = jnp.exp(s)                                         # f32, unnormalized
        l = jnp.sum(p, axis=-1, keepdims=True)                 # (H, L, 1)
        if store_attn:
            p = p * (1.0 / l)                                  # EXACT: probs are returned
            attn_ref[0] = p.astype(attn_ref.dtype)             # single fused store
            o = jnp.einsum("hqk,hkd->hqd", p.astype(cd), v.astype(cd),
                           preferred_element_type=jnp.float32)
        else:
            o = jnp.einsum("hqk,hkd->hqd", p.astype(cd), v.astype(cd),
                           preferred_element_type=jnp.float32)
            o = o * pl.reciprocal(l, approx=True)              # fold 1/l into (H,L,hd)

        # ---- head merge fused into out_proj: batched matmul + head-sum ------
        # (replaces concatenate + (L,C)x(C,C) dot; no relayout)
        attn_out = jnp.einsum("hld,hdc->hlc", o.astype(cd), w_out_ref[...],
                              preferred_element_type=jnp.float32)   # (H, L, C)
        attn_out = jnp.sum(attn_out, axis=0) + b_out_ref[...]       # (L, C)

        # ---- residual + ln_2 + MLP (QuickGELU) + residual --------------------
        x1 = x + attn_out
        h2 = layer_norm(x1, g2_ref[...], be2_ref[...])
        f = jnp.dot(h2.astype(cd), w_fc_ref[...],
                    preferred_element_type=jnp.float32) + b_fc_ref[...]
        f = f * jax.nn.sigmoid(1.702 * f)                      # QuickGELU (f32)
        f = jnp.dot(f.astype(cd), w_pr_ref[...],
                    preferred_element_type=jnp.float32) + b_pr_ref[...]
        y_ref[0] = (x1 + f).astype(y_ref.dtype)

    return kernel


def _const_spec(arr):
    """BlockSpec for a grid-invariant (resident) parameter."""
    nd = arr.ndim
    return pl.BlockSpec(arr.shape, lambda b, _nd=nd: (0,) * _nd)


def _vmem_capacity_bytes():
    """Physical VMEM of the local TPU generation (fallback: 64 MiB, v7x-safe)."""
    default = 64 * 1024 * 1024
    try:
        info = pltpu.get_tpu_info()
    except Exception:
        return default
    for attr in ("vmem_capacity_bytes", "vmem_bytes", "vmem_size_bytes"):
        cap = getattr(info, attr, None)
        if cap:
            return int(cap)
    return default


# ----------------------------------------------------------------------------
# One-time parameter preparation (reshape / scale-fold / bf16 cast).
# ----------------------------------------------------------------------------
def prepare_params(params, n_head, *, compute_dtype=jnp.bfloat16):
    C = params["w_in_T"].shape[0]
    hd = C // n_head
    scale = hd ** (-0.5)
    f32 = jnp.float32

    # Fold the softmax scale into the Q third of in_proj (exact: (xW+b)*s == x(Ws)+(bs)).
    qscale = jnp.concatenate([jnp.full((C,), scale, f32),
                              jnp.ones((2 * C,), f32)])
    w_in = (params["w_in_T"] * qscale[None, :]).astype(compute_dtype)   # (C, 3C)
    b_in = (params["b_in"] * qscale[None, :]).astype(f32)               # (1, 3C)

    # out_proj.weight.T rows are (head, head_dim)-major -> (H, hd, C).
    w_out_h = params["w_out_T"].reshape(n_head, hd, C).astype(compute_dtype)

    weights = [
        w_in, b_in,
        w_out_h, params["b_out"].astype(f32),
        params["ln1_g"].astype(f32), params["ln1_b"].astype(f32),
        params["ln2_g"].astype(f32), params["ln2_b"].astype(f32),
        params["w_fc_T"].astype(compute_dtype), params["b_fc"].astype(f32),
        params["w_pr_T"].astype(compute_dtype), params["b_pr"].astype(f32),
    ]
    return {"weights": weights, "n_head": n_head, "head_dim": hd,
            "d_model": C, "compute_dtype": compute_dtype}


# ----------------------------------------------------------------------------
# Wrapper: MaPLe prompt splicing (glue) + pallas_call for the hot path.
# ----------------------------------------------------------------------------
def maple_block_forward(inputs, prepared, *, first_layer, text_layer,
                        compound_prompt_nctx, attn_mask=None, return_attn=False,
                        attn_dtype=jnp.float32):
    x, compound_prompts_deeper, counter = inputs
    L, N, C = x.shape
    nctx = compound_prompt_nctx
    n_head = prepared["n_head"]
    head_dim = prepared["head_dim"]
    compute_dtype = prepared["compute_dtype"]
    weights = prepared["weights"]
    assert C == prepared["d_model"]

    # --- compound prompt insertion (plain JAX glue, mirrors the PyTorch code)
    if not first_layer and len(compound_prompts_deeper) > 0:
        if not text_layer:
            if not counter > len(compound_prompts_deeper) - 1:
                prefix = x[: L - nctx]
                ctx = compound_prompts_deeper[counter]            # (nctx, C)
                ctx = jnp.broadcast_to(ctx[None], (N, nctx, C)).transpose(1, 0, 2)
                x = jnp.concatenate([prefix, ctx], axis=0)
                counter += 1
        else:
            if not counter > len(compound_prompts_deeper) - 1:
                prefix = x[:1]
                suffix = x[1 + nctx:]
                ctx = compound_prompts_deeper[counter]
                ctx = jnp.broadcast_to(ctx[None], (N, nctx, C)).transpose(1, 0, 2)
                x = jnp.concatenate([prefix, ctx, suffix], axis=0)
                counter += 1

    Lx = x.shape[0]
    has_mask = attn_mask is not None
    if has_mask:
        assert attn_mask.shape == (Lx, Lx)

    xb = jnp.transpose(x, (1, 0, 2)).astype(jnp.float32)          # (N, L, C)

    kernel = make_block_kernel(n_head, head_dim, has_mask=has_mask,
                               store_attn=return_attn, compute_dtype=compute_dtype)

    operands = [xb]
    in_specs = [pl.BlockSpec((1, Lx, C), lambda b: (b, 0, 0))]
    if has_mask:
        operands.append(attn_mask.astype(jnp.float32))
        in_specs.append(pl.BlockSpec((Lx, Lx), lambda b: (0, 0)))
    operands += weights
    in_specs += [_const_spec(a) for a in weights]

    out_shape = [jax.ShapeDtypeStruct((N, Lx, C), jnp.float32)]
    out_specs = [pl.BlockSpec((1, Lx, C), lambda b: (b, 0, 0))]
    if return_attn:
        out_shape.append(jax.ShapeDtypeStruct((N, n_head, Lx, Lx), attn_dtype))
        out_specs.append(pl.BlockSpec((1, n_head, Lx, Lx), lambda b: (b, 0, 0, 0)))

    # --- VMEM budget: per-step blocks & weights are double-buffered by the
    # default pipeline; intermediates carry a 2x margin.  Cap at 85% of the
    # generation's physical VMEM (so v5e/v6e may exceed 64 MiB; v7x stays in
    # its 64 MiB with headroom for compiler scratch).
    blk_bytes = 2 * Lx * C * 4
    if has_mask:
        blk_bytes += Lx * Lx * 4
    if return_attn:
        blk_bytes += n_head * Lx * Lx * jnp.dtype(attn_dtype).itemsize
    w_bytes = sum(math.prod(a.shape) * jnp.dtype(a.dtype).itemsize for a in weights)
    interm = 4 * (2 * Lx * 3 * C                 # qkv + head-split relayout copy
                  + 3 * n_head * Lx * Lx         # scores / probs live copies
                  + 2 * n_head * Lx * head_dim   # o + cast copy
                  + n_head * Lx * C              # per-head out_proj partials
                  + 2 * Lx * 4 * C               # MLP hidden (pre/post GELU)
                  + 4 * Lx * C)                  # ln / residual temporaries
    need = 2 * (blk_bytes + w_bytes) + 2 * interm
    cap = int(0.85 * _vmem_capacity_bytes())
    vmem_limit = max(min(need, cap), min(32 * 1024 * 1024, cap))

    outs = pl.pallas_call(
        kernel,
        out_shape=tuple(out_shape),
        grid=(N,),
        in_specs=in_specs,
        out_specs=tuple(out_specs),
        compiler_params=pltpu.CompilerParams(
            dimension_semantics=("parallel",),
            vmem_limit_bytes=vmem_limit),
    )(*operands)

    if return_attn:
        y, attn = outs
        attn = attn.reshape(N * n_head, Lx, Lx)                   # torch.bmm layout
    else:
        (y,) = outs
        attn = None

    x_out = jnp.transpose(y, (1, 0, 2))                           # back to (L, N, C)

    if return_attn:
        return [x_out, compound_prompts_deeper, counter], attn
    return [x_out, compound_prompts_deeper, counter]


# ----------------------------------------------------------------------------
# Pure-JAX reference (mirrors the bf16 matmul-operand casts of the kernel).
# ----------------------------------------------------------------------------
def _reference_block(xb, mask, params, n_head, compute_dtype=jnp.bfloat16):
    cd = compute_dtype

    def ln(v, g, b):
        mu = jnp.mean(v, -1, keepdims=True)
        var = jnp.mean((v - mu) ** 2, -1, keepdims=True)
        return (v - mu) / jnp.sqrt(var + 1e-5) * g + b

    N, L, C = xb.shape
    H = n_head
    hd = C // H
    h = ln(xb, params["ln1_g"], params["ln1_b"])
    qkv = jnp.einsum("nlc,cd->nld", h.astype(cd), params["w_in_T"].astype(cd),
                     preferred_element_type=jnp.float32) + params["b_in"]
    q, k, v = jnp.split(qkv, 3, axis=-1)
    q = q.reshape(N, L, H, hd).transpose(0, 2, 1, 3) * hd ** -0.5
    k = k.reshape(N, L, H, hd).transpose(0, 2, 1, 3)
    v = v.reshape(N, L, H, hd).transpose(0, 2, 1, 3)
    s = jnp.einsum("nhqd,nhkd->nhqk", q.astype(cd), k.astype(cd),
                   preferred_element_type=jnp.float32)
    if mask is not None:
        s = s + mask
    p = jax.nn.softmax(s, axis=-1)
    o = jnp.einsum("nhqk,nhkd->nhqd", p.astype(cd), v.astype(cd),
                   preferred_element_type=jnp.float32)
    o = o.transpose(0, 2, 1, 3).reshape(N, L, C)
    o = jnp.einsum("nlc,cd->nld", o.astype(cd), params["w_out_T"].astype(cd),
                   preferred_element_type=jnp.float32) + params["b_out"]
    x1 = xb + o
    h2 = ln(x1, params["ln2_g"], params["ln2_b"])
    f = jnp.einsum("nlc,cd->nld", h2.astype(cd), params["w_fc_T"].astype(cd),
                   preferred_element_type=jnp.float32) + params["b_fc"]
    f = f * jax.nn.sigmoid(1.702 * f)
    f = jnp.einsum("nlc,cd->nld", f.astype(cd), params["w_pr_T"].astype(cd),
                   preferred_element_type=jnp.float32) + params["b_pr"]
    return x1 + f, p


# ----------------------------------------------------------------------------
# Main: deterministic params & inputs, run kernel, verify, print KERNEL_OK.
# ----------------------------------------------------------------------------
if __name__ == "__main__":
    d_model, n_head = 32, 4
    L, N = 8, 2
    maple_length = 2          # design_details['maple_length']
    n_deep_prompts = 2

    key = jax.random.PRNGKey(0)
    ks = jax.random.split(key, 12)

    def rnd(k, shape, s=0.02):
        return jax.random.normal(k, shape, jnp.float32) * s

    # PyTorch parameter shapes, stored pre-transposed / row-vector.
    params = {
        "w_in_T": rnd(ks[0], (d_model, 3 * d_model)),     # in_proj.weight.T
        "b_in":   rnd(ks[1], (1, 3 * d_model)),
        "w_out_T": rnd(ks[2], (d_model, d_model)),        # out_proj.weight.T
        "b_out":  rnd(ks[3], (1, d_model)),
        "ln1_g":  jnp.ones((1, d_model), jnp.float32),
        "ln1_b":  jnp.zeros((1, d_model), jnp.float32),
        "ln2_g":  jnp.ones((1, d_model), jnp.float32),
        "ln2_b":  jnp.zeros((1, d_model), jnp.float32),
        "w_fc_T": rnd(ks[4], (d_model, 4 * d_model)),     # mlp.c_fc.weight.T
        "b_fc":   rnd(ks[5], (1, 4 * d_model)),
        "w_pr_T": rnd(ks[6], (4 * d_model, d_model)),     # mlp.c_proj.weight.T
        "b_pr":   rnd(ks[7], (1, d_model)),
    }

    # One-time weight preparation (head reshape, scale folding, bf16 cast).
    prepared = prepare_params(params, n_head)

    x = jax.random.normal(ks[8], (L, N, d_model), jnp.float32)   # (L, N, C)
    prompts = [jax.random.normal(ks[9 + i], (maple_length, d_model), jnp.float32)
               for i in range(n_deep_prompts)]

    # ---- Test 1: visual layer, no mask, attention probs returned ------------
    (x_out, _, counter_out), attn = maple_block_forward(
        [x, prompts, 0], prepared, first_layer=False, text_layer=False,
        compound_prompt_nctx=maple_length, attn_mask=None, return_attn=True)
    x_out = jax.block_until_ready(x_out)
    attn = jax.block_until_ready(attn)

    x_vis = jnp.concatenate(
        [x[: L - maple_length],
         jnp.broadcast_to(prompts[0][None], (N, maple_length, d_model)).transpose(1, 0, 2)],
        axis=0)
    y_ref, p_ref = _reference_block(jnp.transpose(x_vis, (1, 0, 2)), None, params, n_head)
    y_ref = jnp.transpose(y_ref, (1, 0, 2))

    assert x_out.shape == (L, N, d_model)
    assert attn.shape == (N * n_head, L, L)
    assert counter_out == 1
    assert jnp.allclose(x_out, y_ref, atol=1e-2, rtol=1e-2), "x mismatch (visual)"
    assert jnp.allclose(attn, p_ref.reshape(N * n_head, L, L),
                        atol=1e-2, rtol=1e-2), "attn mismatch (visual)"

    # ---- Test 2: same inputs, attention output compiled out (fast path) -----
    x_out2, _, counter2 = maple_block_forward(
        [x, prompts, 0], prepared, first_layer=False, text_layer=False,
        compound_prompt_nctx=maple_length, attn_mask=None, return_attn=False)
    x_out2 = jax.block_until_ready(x_out2)
    assert counter2 == 1
    assert jnp.allclose(x_out2, y_ref, atol=1e-2, rtol=1e-2), "x mismatch (no-attn)"

    # ---- Test 3: text layer with a causal additive mask ---------------------
    causal = jnp.triu(jnp.full((L, L), float("-inf"), jnp.float32), k=1)
    (x_out3, _, counter3), attn3 = maple_block_forward(
        [x, prompts, 0], prepared, first_layer=False, text_layer=True,
        compound_prompt_nctx=maple_length, attn_mask=causal, return_attn=True)
    x_out3 = jax.block_until_ready(x_out3)
    attn3 = jax.block_until_ready(attn3)

    x_txt = jnp.concatenate(
        [x[:1],
         jnp.broadcast_to(prompts[0][None], (N, maple_length, d_model)).transpose(1, 0, 2),
         x[1 + maple_length:]], axis=0)
    y_ref3, p_ref3 = _reference_block(jnp.transpose(x_txt, (1, 0, 2)), causal, params, n_head)
    y_ref3 = jnp.transpose(y_ref3, (1, 0, 2))
    assert counter3 == 1
    assert jnp.allclose(x_out3, y_ref3, atol=1e-2, rtol=1e-2), "x mismatch (text/masked)"
    assert jnp.allclose(attn3, p_ref3.reshape(N * n_head, L, L),
                        atol=1e-2, rtol=1e-2), "attn mismatch (text/masked)"

    print("KERNEL_OK")
</pallas_src>

<mosaic_0001>
module attributes {stable_mosaic.version = 11 : i64} {
  func.func @kernel(%arg0: i32, %arg1: memref<1x8x32xf32, #tpu.memory_space<vmem>>, %arg2: memref<32x96xbf16, #tpu.memory_space<vmem>>, %arg3: memref<1x96xf32, #tpu.memory_space<vmem>>, %arg4: memref<4x8x32xbf16, #tpu.memory_space<vmem>>, %arg5: memref<1x32xf32, #tpu.memory_space<vmem>>, %arg6: memref<1x32xf32, #tpu.memory_space<vmem>>, %arg7: memref<1x32xf32, #tpu.memory_space<vmem>>, %arg8: memref<1x32xf32, #tpu.memory_space<vmem>>, %arg9: memref<1x32xf32, #tpu.memory_space<vmem>>, %arg10: memref<32x128xbf16, #tpu.memory_space<vmem>>, %arg11: memref<1x128xf32, #tpu.memory_space<vmem>>, %arg12: memref<128x32xbf16, #tpu.memory_space<vmem>>, %arg13: memref<1x32xf32, #tpu.memory_space<vmem>>, %arg14: memref<1x8x32xf32, #tpu.memory_space<vmem>>, %arg15: memref<1x4x8x8xf32, #tpu.memory_space<vmem>>) attributes {dimension_semantics = [#tpu.dimension_semantics<parallel>], iteration_bounds = array<i64: 2>, scalar_prefetch = 0 : i64, scratch_operands = 0 : i64, tpu.core_type = #tpu.core_type<tc>, window_params = [{transform_indices = @transform_0, window_bounds = array<i64: 1, 8, 32>}, {pipeline_mode = #tpu.pipeline_mode<synchronous>, transform_indices = @transform_1, window_bounds = array<i64: 32, 96>}, {pipeline_mode = #tpu.pipeline_mode<synchronous>, transform_indices = @transform_2, window_bounds = array<i64: 1, 96>}, {pipeline_mode = #tpu.pipeline_mode<synchronous>, transform_indices = @transform_3, window_bounds = array<i64: 4, 8, 32>}, {pipeline_mode = #tpu.pipeline_mode<synchronous>, transform_indices = @transform_4, window_bounds = array<i64: 1, 32>}, {pipeline_mode = #tpu.pipeline_mode<synchronous>, transform_indices = @transform_5, window_bounds = array<i64: 1, 32>}, {pipeline_mode = #tpu.pipeline_mode<synchronous>, transform_indices = @transform_6, window_bounds = array<i64: 1, 32>}, {pipeline_mode = #tpu.pipeline_mode<synchronous>, transform_indices = @transform_7, window_bounds = array<i64: 1, 32>}, {pipeline_mode = #tpu.pipeline_mode<synchronous>, transform_indices = @transform_8, window_bounds = array<i64: 1, 32>}, {pipeline_mode = #tpu.pipeline_mode<synchronous>, transform_indices = @transform_9, window_bounds = array<i64: 32, 128>}, {pipeline_mode = #tpu.pipeline_mode<synchronous>, transform_indices = @transform_10, window_bounds = array<i64: 1, 128>}, {pipeline_mode = #tpu.pipeline_mode<synchronous>, transform_indices = @transform_11, window_bounds = array<i64: 128, 32>}, {pipeline_mode = #tpu.pipeline_mode<synchronous>, transform_indices = @transform_12, window_bounds = array<i64: 1, 32>}, {transform_indices = @transform_13, window_bounds = array<i64: 1, 8, 32>}, {transform_indices = @transform_14, window_bounds = array<i64: 1, 4, 8, 8>}]} {
    %c0 = arith.constant 0 : index
    %c0_0 = arith.constant 0 : index
    %c0_1 = arith.constant 0 : index
    %0 = vector.load %arg1[%c0, %c0_0, %c0_1] : memref<1x8x32xf32, #tpu.memory_space<vmem>>, vector<1x8x32xf32>
    %1 = vector.shape_cast %0 : vector<1x8x32xf32> to vector<8x32xf32>
    %c0_2 = arith.constant 0 : index
    %c0_3 = arith.constant 0 : index
    %2 = vector.load %arg6[%c0_2, %c0_3] : memref<1x32xf32, #tpu.memory_space<vmem>>, vector<1x32xf32>
    %c0_4 = arith.constant 0 : index
    %c0_5 = arith.constant 0 : index
    %3 = vector.load %arg7[%c0_4, %c0_5] : memref<1x32xf32, #tpu.memory_space<vmem>>, vector<1x32xf32>
    %cst = arith.constant dense<0.000000e+00> : vector<8xf32>
    %4 = vector.multi_reduction <add>, %1, %cst [1] : vector<8x32xf32> to vector<8xf32>
    %5 = vector.shape_cast %4 : vector<8xf32> to vector<8x1xf32>
    %cst_6 = arith.constant 3.200000e+01 : f32
    %6 = vector.broadcast %cst_6 : f32 to vector<8x1xf32>
    %7 = arith.divf %5, %6 : vector<8x1xf32>
    %8 = vector.broadcast %7 : vector<8x1xf32> to vector<8x32xf32>
    %9 = arith.subf %1, %8 : vector<8x32xf32>
    %10 = arith.mulf %9, %9 : vector<8x32xf32>
    %cst_7 = arith.constant dense<0.000000e+00> : vector<8xf32>
    %11 = vector.multi_reduction <add>, %10, %cst_7 [1] : vector<8x32xf32> to vector<8xf32>
    %12 = vector.shape_cast %11 : vector<8xf32> to vector<8x1xf32>
    %cst_8 = arith.constant 3.200000e+01 : f32
    %13 = vector.broadcast %cst_8 : f32 to vector<8x1xf32>
    %14 = arith.divf %12, %13 : vector<8x1xf32>
    %15 = vector.broadcast %7 : vector<8x1xf32> to vector<8x32xf32>
    %16 = arith.subf %1, %15 : vector<8x32xf32>
    %cst_9 = arith.constant 9.99999974E-6 : f32
    %17 = vector.broadcast %cst_9 : f32 to vector<8x1xf32>
    %18 = arith.addf %14, %17 : vector<8x1xf32>
    %19 = math.rsqrt %18 : vector<8x1xf32>
    %20 = vector.broadcast %19 : vector<8x1xf32> to vector<8x32xf32>
    %21 = arith.mulf %16, %20 : vector<8x32xf32>
    %22 = vector.broadcast %2 : vector<1x32xf32> to vector<8x32xf32>
    %23 = arith.mulf %21, %22 : vector<8x32xf32>
    %24 = vector.broadcast %3 : vector<1x32xf32> to vector<8x32xf32>
    %25 = arith.addf %23, %24 : vector<8x32xf32>
    %26 = arith.truncf %25 : vector<8x32xf32> to vector<8x32xbf16>
    %c0_10 = arith.constant 0 : index
    %c0_11 = arith.constant 0 : index
    %27 = vector.load %arg2[%c0_10, %c0_11] : memref<32x96xbf16, #tpu.memory_space<vmem>>, vector<32x96xbf16>
    %cst_12 = arith.constant dense<0.000000e+00> : vector<8x96xf32>
    %28 = tpu.matmul %26, %27, %cst_12 {dimension_numbers = #tpu.dot_dimension_numbers<[1], [0], [0], [1], [0, 0, 1, 1], [], []>} : vector<8x32xbf16>, vector<32x96xbf16>, vector<8x96xf32> -> vector<8x96xf32>
    %c0_13 = arith.constant 0 : index
    %c0_14 = arith.constant 0 : index
    %29 = vector.load %arg3[%c0_13, %c0_14] : memref<1x96xf32, #tpu.memory_space<vmem>>, vector<1x96xf32>
    %30 = vector.broadcast %29 : vector<1x96xf32> to vector<8x96xf32>
    %31 = arith.addf %28, %30 : vector<8x96xf32>
    %32 = vector.shape_cast %31 : vector<8x96xf32> to vector<8x12x8xf32>
    %33 = tpu.transpose %32, [1, 0, 2] : vector<8x12x8xf32> -> vector<12x8x8xf32>
    %34 = vector.extract_strided_slice %33 {offsets = [0, 0, 0], sizes = [4, 8, 8], strides = [1, 1, 1]} : vector<12x8x8xf32> to vector<4x8x8xf32>
    %35 = vector.extract_strided_slice %33 {offsets = [4, 0, 0], sizes = [4, 8, 8], strides = [1, 1, 1]} : vector<12x8x8xf32> to vector<4x8x8xf32>
    %36 = vector.extract_strided_slice %33 {offsets = [8, 0, 0], sizes = [4, 8, 8], strides = [1, 1, 1]} : vector<12x8x8xf32> to vector<4x8x8xf32>
    %37 = arith.truncf %34 : vector<4x8x8xf32> to vector<4x8x8xbf16>
    %38 = arith.truncf %35 : vector<4x8x8xf32> to vector<4x8x8xbf16>
    "tpu.trace_start"() <{level = 10 : i32, message = "hqd,hkd->hqk"}> : () -> ()
    %cst_15 = arith.constant dense<0.000000e+00> : vector<4x8x8xf32>
    %39 = tpu.matmul %37, %38, %cst_15 {dimension_numbers = #tpu.dot_dimension_numbers<[2], [2], [1], [1], [0, 0, 0, 1, 1, 1], [0], [0]>} : vector<4x8x8xbf16>, vector<4x8x8xbf16>, vector<4x8x8xf32> -> vector<4x8x8xf32>
    "tpu.trace_stop"() : () -> ()
    %cst_16 = arith.constant dense<0xFF800000> : vector<4x8xf32>
    %40 = vector.multi_reduction <maximumf>, %39, %cst_16 [2] : vector<4x8x8xf32> to vector<4x8xf32>
    %41 = vector.shape_cast %40 : vector<4x8xf32> to vector<4x8x1xf32>
    %42 = vector.broadcast %41 : vector<4x8x1xf32> to vector<4x8x8xf32>
    %43 = arith.subf %39, %42 : vector<4x8x8xf32>
    %44 = math.exp %43 : vector<4x8x8xf32>
    %cst_17 = arith.constant dense<0.000000e+00> : vector<4x8xf32>
    %45 = vector.multi_reduction <add>, %44, %cst_17 [2] : vector<4x8x8xf32> to vector<4x8xf32>
    %46 = vector.shape_cast %45 : vector<4x8xf32> to vector<4x8x1xf32>
    %cst_18 = arith.constant 1.000000e+00 : f32
    %47 = vector.broadcast %cst_18 : f32 to vector<4x8x1xf32>
    %48 = arith.divf %47, %46 : vector<4x8x1xf32>
    %49 = vector.broadcast %48 : vector<4x8x1xf32> to vector<4x8x8xf32>
    %50 = arith.mulf %44, %49 : vector<4x8x8xf32>
    %c0_19 = arith.constant 0 : index
    %c0_20 = arith.constant 0 : index
    %c0_21 = arith.constant 0 : index
    %c0_22 = arith.constant 0 : index
    %51 = vector.load %arg15[%c0_19, %c0_20, %c0_21, %c0_22] : memref<1x4x8x8xf32, #tpu.memory_space<vmem>>, vector<1x4x8x8xf32>
    %52 = vector.shape_cast %51 : vector<1x4x8x8xf32> to vector<4x8x8xf32>
    %53 = vector.shape_cast %50 : vector<4x8x8xf32> to vector<1x4x8x8xf32>
    tpu.vector_store %arg15[%c0_19, %c0_20, %c0_21, %c0_22], %53 {strides = array<i32>} : memref<1x4x8x8xf32, #tpu.memory_space<vmem>>, vector<1x4x8x8xf32>,
    %54 = arith.truncf %50 : vector<4x8x8xf32> to vector<4x8x8xbf16>
    %55 = arith.truncf %36 : vector<4x8x8xf32> to vector<4x8x8xbf16>
    "tpu.trace_start"() <{level = 10 : i32, message = "hqk,hkd->hqd"}> : () -> ()
    %cst_23 = arith.constant dense<0.000000e+00> : vector<4x8x8xf32>
    %56 = tpu.matmul %54, %55, %cst_23 {dimension_numbers = #tpu.dot_dimension_numbers<[2], [1], [1], [2], [0, 0, 0, 1, 1, 2], [0], [0]>} : vector<4x8x8xbf16>, vector<4x8x8xbf16>, vector<4x8x8xf32> -> vector<4x8x8xf32>
    "tpu.trace_stop"() : () -> ()
    %57 = arith.truncf %56 : vector<4x8x8xf32> to vector<4x8x8xbf16>
    %c0_24 = arith.constant 0 : index
    %c0_25 = arith.constant 0 : index
    %c0_26 = arith.constant 0 : index
    %58 = vector.load %arg4[%c0_24, %c0_25, %c0_26] : memref<4x8x32xbf16, #tpu.memory_space<vmem>>, vector<4x8x32xbf16>
    "tpu.trace_start"() <{level = 10 : i32, message = "hld,hdc->hlc"}> : () -> ()
    %cst_27 = arith.constant dense<0.000000e+00> : vector<4x8x32xf32>
    %59 = tpu.matmul %57, %58, %cst_27 {dimension_numbers = #tpu.dot_dimension_numbers<[2], [1], [1], [2], [0, 0, 0, 1, 1, 2], [0], [0]>} : vector<4x8x8xbf16>, vector<4x8x32xbf16>, vector<4x8x32xf32> -> vector<4x8x32xf32>
    "tpu.trace_stop"() : () -> ()
    %cst_28 = arith.constant dense<0.000000e+00> : vector<8x32xf32>
    %60 = vector.multi_reduction <add>, %59, %cst_28 [0] : vector<4x8x32xf32> to vector<8x32xf32>
    %c0_29 = arith.constant 0 : index
    %c0_30 = arith.constant 0 : index
    %61 = vector.load %arg5[%c0_29, %c0_30] : memref<1x32xf32, #tpu.memory_space<vmem>>, vector<1x32xf32>
    %62 = vector.broadcast %61 : vector<1x32xf32> to vector<8x32xf32>
    %63 = arith.addf %60, %62 : vector<8x32xf32>
    %64 = arith.addf %1, %63 : vector<8x32xf32>
    %c0_31 = arith.constant 0 : index
    %c0_32 = arith.constant 0 : index
    %65 = vector.load %arg8[%c0_31, %c0_32] : memref<1x32xf32, #tpu.memory_space<vmem>>, vector<1x32xf32>
    %c0_33 = arith.constant 0 : index
    %c0_34 = arith.constant 0 : index
    %66 = vector.load %arg9[%c0_33, %c0_34] : memref<1x32xf32, #tpu.memory_space<vmem>>, vector<1x32xf32>
    %cst_35 = arith.constant dense<0.000000e+00> : vector<8xf32>
    %67 = vector.multi_reduction <add>, %64, %cst_35 [1] : vector<8x32xf32> to vector<8xf32>
    %68 = vector.shape_cast %67 : vector<8xf32> to vector<8x1xf32>
    %cst_36 = arith.constant 3.200000e+01 : f32
    %69 = vector.broadcast %cst_36 : f32 to vector<8x1xf32>
    %70 = arith.divf %68, %69 : vector<8x1xf32>
    %71 = vector.broadcast %70 : vector<8x1xf32> to vector<8x32xf32>
    %72 = arith.subf %64, %71 : vector<8x32xf32>
    %73 = arith.mulf %72, %72 : vector<8x32xf32>
    %cst_37 = arith.constant dense<0.000000e+00> : vector<8xf32>
    %74 = vector.multi_reduction <add>, %73, %cst_37 [1] : vector<8x32xf32> to vector<8xf32>
    %75 = vector.shape_cast %74 : vector<8xf32> to vector<8x1xf32>
    %cst_38 = arith.constant 3.200000e+01 : f32
    %76 = vector.broadcast %cst_38 : f32 to vector<8x1xf32>
    %77 = arith.divf %75, %76 : vector<8x1xf32>
    %78 = vector.broadcast %70 : vector<8x1xf32> to vector<8x32xf32>
    %79 = arith.subf %64, %78 : vector<8x32xf32>
    %cst_39 = arith.constant 9.99999974E-6 : f32
    %80 = vector.broadcast %cst_39 : f32 to vector<8x1xf32>
    %81 = arith.addf %77, %80 : vector<8x1xf32>
    %82 = math.rsqrt %81 : vector<8x1xf32>
    %83 = vector.broadcast %82 : vector<8x1xf32> to vector<8x32xf32>
    %84 = arith.mulf %79, %83 : vector<8x32xf32>
    %85 = vector.broadcast %65 : vector<1x32xf32> to vector<8x32xf32>
    %86 = arith.mulf %84, %85 : vector<8x32xf32>
    %87 = vector.broadcast %66 : vector<1x32xf32> to vector<8x32xf32>
    %88 = arith.addf %86, %87 : vector<8x32xf32>
    %89 = arith.truncf %88 : vector<8x32xf32> to vector<8x32xbf16>
    %c0_40 = arith.constant 0 : index
    %c0_41 = arith.constant 0 : index
    %90 = vector.load %arg10[%c0_40, %c0_41] : memref<32x128xbf16, #tpu.memory_space<vmem>>, vector<32x128xbf16>
    %cst_42 = arith.constant dense<0.000000e+00> : vector<8x128xf32>
    %91 = tpu.matmul %89, %90, %cst_42 {dimension_numbers = #tpu.dot_dimension_numbers<[1], [0], [0], [1], [0, 0, 1, 1], [], []>} : vector<8x32xbf16>, vector<32x128xbf16>, vector<8x128xf32> -> vector<8x128xf32>
    %c0_43 = arith.constant 0 : index
    %c0_44 = arith.constant 0 : index
    %92 = vector.load %arg11[%c0_43, %c0_44] : memref<1x128xf32, #tpu.memory_space<vmem>>, vector<1x128xf32>
    %93 = vector.broadcast %92 : vector<1x128xf32> to vector<8x128xf32>
    %94 = arith.addf %91, %93 : vector<8x128xf32>
    %cst_45 = arith.constant 1.702000e+00 : f32
    %95 = vector.broadcast %cst_45 : f32 to vector<8x128xf32>
    %96 = arith.mulf %95, %94 : vector<8x128xf32>
    %97 = arith.negf %96 : vector<8x128xf32>
    %98 = math.exp %97 : vector<8x128xf32>
    %cst_46 = arith.constant 1.000000e+00 : f32
    %99 = vector.broadcast %cst_46 : f32 to vector<8x128xf32>
    %100 = arith.addf %99, %98 : vector<8x128xf32>
    %101 = arith.divf %99, %100 : vector<8x128xf32>
    %102 = arith.mulf %94, %101 : vector<8x128xf32>
    %103 = arith.truncf %102 : vector<8x128xf32> to vector<8x128xbf16>
    %c0_47 = arith.constant 0 : index
    %c0_48 = arith.constant 0 : index
    %104 = vector.load %arg12[%c0_47, %c0_48] : memref<128x32xbf16, #tpu.memory_space<vmem>>, vector<128x32xbf16>
    %cst_49 = arith.constant dense<0.000000e+00> : vector<8x32xf32>
    %105 = tpu.matmul %103, %104, %cst_49 {dimension_numbers = #tpu.dot_dimension_numbers<[1], [0], [0], [1], [0, 0, 1, 1], [], []>} : vector<8x128xbf16>, vector<128x32xbf16>, vector<8x32xf32> -> vector<8x32xf32>
    %c0_50 = arith.constant 0 : index
    %c0_51 = arith.constant 0 : index
    %106 = vector.load %arg13[%c0_50, %c0_51] : memref<1x32xf32, #tpu.memory_space<vmem>>, vector<1x32xf32>
    %107 = vector.broadcast %106 : vector<1x32xf32> to vector<8x32xf32>
    %108 = arith.addf %105, %107 : vector<8x32xf32>
    %109 = arith.addf %64, %108 : vector<8x32xf32>
    %c0_52 = arith.constant 0 : index
    %c0_53 = arith.constant 0 : index
    %c0_54 = arith.constant 0 : index
    %110 = vector.load %arg14[%c0_52, %c0_53, %c0_54] : memref<1x8x32xf32, #tpu.memory_space<vmem>>, vector<1x8x32xf32>
    %111 = vector.shape_cast %110 : vector<1x8x32xf32> to vector<8x32xf32>
    %112 = vector.shape_cast %109 : vector<8x32xf32> to vector<1x8x32xf32>
    tpu.vector_store %arg14[%c0_52, %c0_53, %c0_54], %112 {strides = array<i32>} : memref<1x8x32xf32, #tpu.memory_space<vmem>>, vector<1x8x32xf32>,
    return
  }
  func.func @transform_0(%arg0: i32) -> (i32, i32, i32) {
    %c0_i32 = arith.constant 0 : i32
    %c0_i32_0 = arith.constant 0 : i32
    %c0_i32_1 = arith.constant 0 : i32
    return %arg0, %c0_i32, %c0_i32_0 : i32, i32, i32
  }
  func.func @transform_1(%arg0: i32) -> (i32, i32) {
    %c0_i32 = arith.constant 0 : i32
    %c0_i32_0 = arith.constant 0 : i32
    %c0_i32_1 = arith.constant 0 : i32
    return %c0_i32, %c0_i32_0 : i32, i32
  }
  func.func @transform_2(%arg0: i32) -> (i32, i32) {
    %c0_i32 = arith.constant 0 : i32
    %c0_i32_0 = arith.constant 0 : i32
    %c0_i32_1 = arith.constant 0 : i32
    return %c0_i32, %c0_i32_0 : i32, i32
  }
  func.func @transform_3(%arg0: i32) -> (i32, i32, i32) {
    %c0_i32 = arith.constant 0 : i32
    %c0_i32_0 = arith.constant 0 : i32
    %c0_i32_1 = arith.constant 0 : i32
    %c0_i32_2 = arith.constant 0 : i32
    return %c0_i32, %c0_i32_0, %c0_i32_1 : i32, i32, i32
  }
  func.func @transform_4(%arg0: i32) -> (i32, i32) {
    %c0_i32 = arith.constant 0 : i32
    %c0_i32_0 = arith.constant 0 : i32
    %c0_i32_1 = arith.constant 0 : i32
    return %c0_i32, %c0_i32_0 : i32, i32
  }
  func.func @transform_5(%arg0: i32) -> (i32, i32) {
    %c0_i32 = arith.constant 0 : i32
    %c0_i32_0 = arith.constant 0 : i32
    %c0_i32_1 = arith.constant 0 : i32
    return %c0_i32, %c0_i32_0 : i32, i32
  }
  func.func @transform_6(%arg0: i32) -> (i32, i32) {
    %c0_i32 = arith.constant 0 : i32
    %c0_i32_0 = arith.constant 0 : i32
    %c0_i32_1 = arith.constant 0 : i32
    return %c0_i32, %c0_i32_0 : i32, i32
  }
  func.func @transform_7(%arg0: i32) -> (i32, i32) {
    %c0_i32 = arith.constant 0 : i32
    %c0_i32_0 = arith.constant 0 : i32
    %c0_i32_1 = arith.constant 0 : i32
    return %c0_i32, %c0_i32_0 : i32, i32
  }
  func.func @transform_8(%arg0: i32) -> (i32, i32) {
    %c0_i32 = arith.constant 0 : i32
    %c0_i32_0 = arith.constant 0 : i32
    %c0_i32_1 = arith.constant 0 : i32
    return %c0_i32, %c0_i32_0 : i32, i32
  }
  func.func @transform_9(%arg0: i32) -> (i32, i32) {
    %c0_i32 = arith.constant 0 : i32
    %c0_i32_0 = arith.constant 0 : i32
    %c0_i32_1 = arith.constant 0 : i32
    return %c0_i32, %c0_i32_0 : i32, i32
  }
  func.func @transform_10(%arg0: i32) -> (i32, i32) {
    %c0_i32 = arith.constant 0 : i32
    %c0_i32_0 = arith.constant 0 : i32
    %c0_i32_1 = arith.constant 0 : i32
    return %c0_i32, %c0_i32_0 : i32, i32
  }
  func.func @transform_11(%arg0: i32) -> (i32, i32) {
    %c0_i32 = arith.constant 0 : i32
    %c0_i32_0 = arith.constant 0 : i32
    %c0_i32_1 = arith.constant 0 : i32
    return %c0_i32, %c0_i32_0 : i32, i32
  }
  func.func @transform_12(%arg0: i32) -> (i32, i32) {
    %c0_i32 = arith.constant 0 : i32
    %c0_i32_0 = arith.constant 0 : i32
    %c0_i32_1 = arith.constant 0 : i32
    return %c0_i32, %c0_i32_0 : i32, i32
  }
  func.func @transform_13(%arg0: i32) -> (i32, i32, i32) {
    %c0_i32 = arith.constant 0 : i32
    %c0_i32_0 = arith.constant 0 : i32
    %c0_i32_1 = arith.constant 0 : i32
    return %arg0, %c0_i32, %c0_i32_0 : i32, i32, i32
  }
  func.func @transform_14(%arg0: i32) -> (i32, i32, i32, i32) {
    %c0_i32 = arith.constant 0 : i32
    %c0_i32_0 = arith.constant 0 : i32
    %c0_i32_1 = arith.constant 0 : i32
    %c0_i32_2 = arith.constant 0 : i32
    return %arg0, %c0_i32, %c0_i32_0, %c0_i32_1 : i32, i32, i32, i32
  }
}

</mosaic_0001>

<bundles_post_ra>
// kernel: tpu_custom_call.1
= control target key start
LH: loop header
LB: loop body
LE: loop exit
PB: predicated region body
PF: predicated region fallthrough
CT: control target
= control target key end

     0   :  { %s2902_s0 = inlined_call_operand.vmem [shape: f32[2,8,32], index: 0, kind: input, shape index: {}]   ;;  %s2903_s1 = inlined_call_operand.vmem [shape: bf16[32,96], index: 1, kind: input, shape index: {}]   ;;  %s2904_s2 = inlined_call_operand.vmem [shape: f32[1,96], index: 2, kind: input, shape index: {}]   ;;  %s2905_s3 = inlined_call_operand.vmem [shape: bf16[4,8,32], index: 3, kind: input, shape index: {}]   ;;  %s2906_s4 = inlined_call_operand.vmem [shape: f32[1,32], index: 4, kind: input, shape index: {}]   ;;  %s2907_s5 = inlined_call_operand.vmem [shape: f32[1,32], index: 5, kind: input, shape index: {}]   ;;  %s2908_s6 = inlined_call_operand.vmem [shape: f32[1,32], index: 6, kind: input, shape index: {}]   ;;  %s2909_s7 = inlined_call_operand.vmem [shape: f32[1,32], index: 7, kind: input, shape index: {}]   ;;  %s2910_s8 = inlined_call_operand.vmem [shape: f32[1,32], index: 8, kind: input, shape index: {}]   ;;  %s2911_s9 = inlined_call_operand.vmem [shape: bf16[32,128], index: 9, kind: input, shape index: {}]   ;;  %s2912_s10 = inlined_call_operand.vmem [shape: f32[1,128], index: 10, kind: input, shape index: {}]   ;;  %s2913_s11 = inlined_call_operand.vmem [shape: bf16[128,32], index: 11, kind: input, shape index: {}]   ;;  %s2914_s12 = inlined_call_operand.vmem [shape: f32[1,32], index: 12, kind: input, shape index: {}]   ;;  %s2915_s13 = inlined_call_operand.hbm [shape: f32[2,8,32], index: 13, kind: output, shape index: {0}]   ;;  %s2916_s14 = inlined_call_operand.hbm [shape: f32[2,4,8,8], index: 14, kind: output, shape index: {1}]  }
   0x1   :  { %2917 = sst [smem:[#allocation8_spill]] %s2902_s0 }
   0x2   :  { %2918 = sst [smem:[#allocation9_spill]] %s2903_s1 }
   0x3   :  { %2919 = sst [smem:[#allocation10_spill]] %s2904_s2 }
   0x4   :  { %2920 = sst [smem:[#allocation11_spill]] %s2905_s3 }
   0x5   :  { %2921 = sst [smem:[#allocation12_spill]] %s2906_s4 }
   0x6   :  { %2922 = sst [smem:[#allocation13_spill]] %s2907_s5 }
   0x7   :  { %2923 = sst [smem:[#allocation14_spill]] %s2908_s6 }
   0x8   :  { %20 = vsyncpa [#allocation3], 0 }
   0x9   :  { %22 = vsyncpa [#allocation3 + $0x1], 0 }
   0xa   :  { %23 = vsyncpa [#allocation5], 0 }
   0xb   :  { %25 = vsyncpa [#allocation5 + $0x1], 0  ;;  %s2500_s29 = smov 0   ;;  %s2502_s30 = smov 0  }
   0xc   :  { %s2504_s15 = smov 0   ;;  %s2506_s16 = smov 0  }
   0xd LB: > { %s2521_s17 = sadd.s32 4294967295, %s2404_s16   ;;  %s2006_s18 = sadd.s32 4294967294, %s2404_s16   ;;  %s2404_s16 = sphi %s2506_s16, %s2937_s16   ;;  %s2400_s15 = sphi %s2504_s15, %s2936_s15   ;;  %s2396_s30 = sphi %s2502_s30, %s2935_s30   ;;  %s2392_s29 = sphi %s2500_s29, %s2934_s29  }
   0xe   : > { %s2525_s19 = sadd.s32 1, %s2404_s16   ;;  %s316_s20 = sadd.s32 1, %s2400_s15 }
   0xf   : > { %s313_s21 = ssub.s32 %s2404_s16, %s2525_s19  ;;  %p326_p0 = scmp.ne.s32.totalorder %s2400_s15, %s2396_s30 }
  0x10   : > { %p314_p1 = scmp.eq.s32.totalorder %s313_s21, 0  ;;  %p327_p2 = scmp.eq.s32.totalorder %s2521_s17, 1 }
  0x11   : > { %p332_p3 = scmp.ne.s32.totalorder %s2396_s30, %s2392_s29  ;;  %p333_p4 = scmp.eq.s32.totalorder %s2006_s18, 1 }
  0x12   : > { %s2536_s22 = scalar_select %p314_p1, %s2400_s15, %s316_s20  }
  0x13   : > { %p2538_p5 = por %p327_p2, %p326_p0  ;;  %p2542_p6 = por %p333_p4, %p332_p3 }
  0x14   : > { %p2009_p7 = scmp.ge.s32.totalorder %s2404_s16, 1  ;;  %p420_p8 = scmp.lt.s32.totalorder %s2404_s16, 3 }
  0x16   : > { %p421_p9 = pnand %p2009_p7, %p420_p8 }
  0x17   : > { %p470_p10 = scmp.lt.s32.totalorder (!%p421_p9), %s2521_s17, 1  ;;  %vm478_vm0 = vcmask (!%p421_p9), 261120   ;;  %s2926_s0 = sld [smem:[#allocation8_spill]] (!%p421_p9)  ;;  %v2406_v8 = vmov (!%p421_p9), 0.0   ;;  %vm2407_vm1 = vmmov (!%p421_p9), 0   ;;  %v613_v28 = vlaneseq (!%p421_p9) }
  0x18   : > { %424 = sbr.rel (%p421_p9) target bundleno = 2535 (0x9e7), region = 72  ;;  %s2927_s1 = sld [smem:[#allocation9_spill]] (!%p421_p9)  ;;  %2105 = vmatprep.subr.bf16.mxu1 (!%p421_p9), %v2406_v8  ;;  %2109 = vmatprep.mubr.msk.bf16.mxu1 (!%p421_p9), %vm2407_vm1, %v2406_v8  ;;  %v2415_v26 = vmov (!%p421_p9), 1983009808   ;;  %v2416_v30 = vmov (!%p421_p9), 1934713408  }
  0x19   : > { %2131 = vmatprep.subr.bf16.mxu0 (!%p421_p9), %v2406_v8  ;;  %2133 = vmatprep.mubr.msk.bf16.mxu0 (!%p421_p9), %vm2407_vm1, %v2406_v8  ;;  %s2928_s5 = sld [smem:[#allocation13_spill]] (!%p421_p9)  ;;  %s2929_s6 = sld [smem:[#allocation14_spill]] (!%p421_p9)  ;;  %v611_v27 = vunpack.c.l.s4 (!%p421_p9), %v2415_v26  ;;  %v675_v31 = vunpack.c.l.s4 (!%p421_p9), %v2416_v30  ;;  %v614_v33 = vshrl.u32 (!%p421_p9), %v613_v28, 7  ;;  %vm1024_vm2 = vcmask (!%p421_p9), 64512  }
  0x1a   : > { %s2930_s2 = sld [smem:[#allocation10_spill]] (!%p421_p9)  ;;  %s2409_s27 = smov (!%p421_p9), 96   ;;  %vm1272_vm3 = vcmask (!%p421_p9), 1043456  }
  0x1b   : > { %s2410_s28 = smov (!%p421_p9), 88   ;;  %s2412_s20 = smov (!%p421_p9), 120   ;;  %v612_v32 = vunpack.c.0.s8 (!%p421_p9), %v611_v27  ;;  %v676_v36 = vunpack.c.0.s8 (!%p421_p9), %v675_v31 }
  0x1c   : > { %s2413_s21 = smov (!%p421_p9), 112   ;;  %s2931_s3 = sld [smem:[#allocation11_spill]] (!%p421_p9) }
  0x1d   : > { %v2594_v37 = vsub.s32 (!%p421_p9), %v612_v32, %v614_v33  ;;  %v2596_v43 = vsub.s32 (!%p421_p9), %v676_v36, %v614_v33  ;;  %s2932_s4 = sld [smem:[#allocation12_spill]] (!%p421_p9) }
  0x1e   : > { %v2274_v7 = vld [vmem:[%s2927_s1] sm:$0xff] (!%p421_p9)   ;;  %v2275_v9 = vld [vmem:[%s2927_s1 + $0x8] sm:$0xff] (!%p421_p9)   ;;  %s2421_s1 = smov (!%p421_p9), [#allocation4]  }
  0x1f   : > { %s471_s25 = scalar_select %p470_p10, %s2521_s17, 1  ;;  %2106 = vmatpush3.bf16.msra.mxu1 %v2274_v7  ;;  %v2013_v14 = vld [vmem:[%s2928_s5] ss:$0 sm:$0xff] }
  0x20   : > { %2107 = vmatprep.subr.bf16.mxu1 %v2406_v8  ;;  %v2014_v16 = vld [vmem:[%s2929_s6] ss:$0 sm:$0xff] }
  0x21   : > { %s2012_s26 = sshll.u32 %s471_s25, 3  ;;  %v2015_v20 = vld [vmem:[%s2930_s2] ss:$0 sm:$0xff]  ;;  %s2414_s25 = smov 104  }
  0x22   : > { %s473_s18 = scalar_lea.vmem %s2926_s0, %s2012_s26  ;;  %s2408_s26 = smov 80  }
  0x23   : > { %v2553_v0 = vld [vmem:[%s473_s18] sm:$0xff]  ;;  %2108 = vmatpush3.bf16.msra.mxu1 %v2275_v9  ;;  %s2411_s18 = smov 72   ;;  %s2065_s0 = sshll.u32 %s2521_s17, 9 }
  0x24   : > { %v479_v1 = vsel %vm478_vm0, %v2553_v0, 0.0  ;;  %2113 = vmatprep.subr.bf16.mxu1 %v2406_v8 }
  0x25   : > { %480 = vadd.xlane.f32.xlu0 %v479_v1 }
  0xb2   : > { %v481_v2 = vpop.xlane.xlu0 %480 }
  0xb3   : > { %v483_v3 = vmul.f32 0.03125, %v481_v2 }
  0xb5   : > { %v484_v4 = vsub.f32 %v2553_v0, %v483_v3 }
  0xb7   : > { %v485_v5 = vmul.f32 %v484_v4, %v484_v4 }
  0xb9   : > { %v486_v6 = vsel %vm478_vm0, %v485_v5, 0.0 }
  0xba   : > { %487 = vadd.xlane.f32.xlu0 %v486_v6 }
 0x147   : > { %v488_v10 = vpop.xlane.xlu0 %487 }
 0x148   : > { %v489_v11 = vmul.f32 0.03125, %v488_v10 }
 0x14a   : > { %v490_v12 = vadd.f32 1e-05, %v489_v11 }
 0x14c   : > { %2286 = vrsqrt.f32 %v490_v12 }
 0x156   : > { %v2287_v13 = vpop.eup %2286 }
 0x157   : > { %v492_v15 = vmul.f32 %v2287_v13, %v484_v4 }
 0x159   : > { %v499_v17 = vmul.f32 %v2013_v14, %v492_v15 }
 0x15b   : > { %v506_v18 = vadd.f32 %v2014_v16, %v499_v17 }
 0x15d   : > { %v507_v19 = vpack.c.bf16 %v506_v18, %v506_v18 }
 0x15f   : > { %2110 = vmatmul.mubr.msk.bf16.vlgmr.msra.gmra.mrb[0].mxu1 %vm478_vm0, %v507_v19 }
 0x160   : > { %2115 = vmatprep.mubr.msk.bf16.mxu1 %vm2407_vm1, %v2406_v8 }
 0x232   : > { %v568_v21 = vpop.f32.mrb[0].mxu1 }
 0x233   : > { %v2585_v22 = vadd.f32 %v2015_v20, %v568_v21  ;;  %v2111_v23 = vpop.f32.mrb[1].mxu1 }
 0x234   : > { %v571_v24 = vpop.f32.mrb[2].mxu1 }
 0x235   : > { %590 = vrot.lane.b32.xlu0 %v2585_v22, %s2408_s26  ;;  %584 = vrot.lane.b32.xlu1 %v2585_v22, %s2409_s27  ;;  %v2112_v25 = vpop.f32.mrb[3].mxu1  ;;  %s2417_s26 = smov 64   ;;  %s2418_s27 = smov 48  }
 0x239   : > { %587 = vrot.lane.b32.xlu1 %v2585_v22, %s2410_s28  ;;  %s2419_s28 = smov 40  }
 0x23d   : > { %593 = vrot.lane.b32.xlu1 %v2585_v22, %s2411_s18  ;;  %s2420_s18 = smov 56  }
 0x241   : > { %575 = vrot.lane.b32.xlu1 %v2585_v22, %s2412_s20  ;;  %s2671_s20 = sand.u32 1, %s2396_s30  }
 0x245   : > { %578 = vrot.lane.b32.xlu1 %v2585_v22, %s2413_s21  ;;  %s2011_s21 = sshll.u32 %s2671_s20, 5 }
 0x249   : > { %581 = vrot.lane.b32.xlu1 %v2585_v22, %s2414_s25  ;;  %s2674_s25 = scalar_lea.vmem [#allocation4], %s2011_s21  ;;  %s2823_s21 = scalar_lea.hbm %s2916_s14, %s2065_s0 }
 0x24a   : > { %s1912_s2 = sshll.u32 %s2674_s25, 4  ;;  %s2818_s2 = int_to_ptr.vmem [resolvable:$true] %s1912_s2 }
 0x2a7   : > { %v585_v29 = vpop.permute.xlu1 %584  ;;  %v591_v34 = vpop.permute.xlu0 %590 }
 0x2a8   : > { %v640_v38 = vcombine.low %v585_v29, %v591_v34  ;;  %v641_v39 = vcombine.high %v585_v29, %v591_v34 }
 0x2aa   : > { %v648_v44 = vrot.slane %v640_v38, %v2594_v37  ;;  %v655_v45 = vrot.slane %v641_v39, %v2594_v37 }
 0x2ab   : > { %v588_v35 = vpop.permute.xlu1 %587 }
 0x2af   : > { %v594_v40 = vpop.permute.xlu1 %593 }
 0x2b0   : > { %v656_v41 = vcombine.low %v588_v35, %v594_v40  ;;  %v657_v42 = vcombine.high %v588_v35, %v594_v40 }
 0x2b2   : > { %v664_v46 = vrot.slane %v656_v41, %v2594_v37  ;;  %v671_v47 = vrot.slane %v657_v42, %v2594_v37 }
 0x2b3   : > { %v576_v48 = vpop.permute.xlu1 %575 }
 0x2b4   : > { %v704_v49 = vcombine.low %v648_v44, %v664_v46  ;;  %v705_v50 = vcombine.high %v648_v44, %v664_v46  ;;  %v720_v51 = vcombine.low %v655_v45, %v671_v47  ;;  %v721_v52 = vcombine.high %v655_v45, %v671_v47 }
 0x2b6   : > { %v712_v53 = vrot.slane %v704_v49, %v2596_v43  ;;  %v719_v54 = vrot.slane %v705_v50, %v2596_v43  ;;  %v728_v55 = vrot.slane %v720_v51, %v2596_v43  ;;  %v735_v56 = vrot.slane %v721_v52, %v2596_v43 }
 0x2b7   : > { %v579_v57 = vpop.permute.xlu1 %578 }
 0x2b8   : > { %v2020_v58 = vcombine.low %v712_v53, %v719_v54  ;;  %v2022_v59 = vcombine.high %v712_v53, %v719_v54  ;;  %v2024_v60 = vcombine.low %v728_v55, %v735_v56  ;;  %v2026_v61 = vcombine.high %v728_v55, %v735_v56 }
 0x2b9   : > { %v608_v62 = vcombine.low %v2585_v22, %v579_v57  ;;  %v609_v63 = vcombine.high %v2585_v22, %v579_v57 }
 0x2ba   : > { %v827_v1 = vrot.slane %v2020_v58, %v2594_v37  ;;  %v843_v2 = vrot.slane %v2022_v59, %v2594_v37  ;;  %v859_v3 = vrot.slane %v2024_v60, %v2594_v37  ;;  %v875_v4 = vrot.slane %v2026_v61, %v2594_v37 }
 0x2bb   : > { %v582_v5 = vpop.permute.xlu1 %581  ;;  %v616_v11 = vrot.slane %v608_v62, %v2594_v37  ;;  %v623_v12 = vrot.slane %v609_v63, %v2594_v37 }
 0x2bc   : > { %v624_v6 = vcombine.low %v576_v48, %v582_v5  ;;  %v625_v7 = vcombine.high %v576_v48, %v582_v5  ;;  %v892_v9 = vcombine.low %v827_v1, %v843_v2  ;;  %v924_v10 = vcombine.low %v859_v3, %v875_v4 }
 0x2bd   : > { %v893_v13 = vcombine.high %v827_v1, %v843_v2  ;;  %v925_v14 = vcombine.high %v859_v3, %v875_v4 }
 0x2be   : > { %v632_v15 = vrot.slane %v624_v6, %v2594_v37  ;;  %v639_v16 = vrot.slane %v625_v7, %v2594_v37  ;;  %v900_v17 = vrot.slane %v892_v9, %v2596_v43  ;;  %v932_v18 = vrot.slane %v924_v10, %v2596_v43 }
 0x2bf   : > { %v907_v19 = vrot.slane %v893_v13, %v2596_v43  ;;  %v939_v20 = vrot.slane %v925_v14, %v2596_v43 }
 0x2c0   : > { %v672_v21 = vcombine.low %v616_v11, %v632_v15  ;;  %v673_v23 = vcombine.high %v616_v11, %v632_v15  ;;  %v688_v24 = vcombine.low %v623_v12, %v639_v16  ;;  %v689_v25 = vcombine.high %v623_v12, %v639_v16 }
 0x2c1   : > { %v944_v26 = vcombine.low %v900_v17, %v932_v18  ;;  %v947_v27 = vcombine.high %v907_v19, %v939_v20  ;;  %v945_v46 = vcombine.high %v900_v17, %v932_v18  ;;  %v946_v61 = vcombine.low %v907_v19, %v939_v20 }
 0x2c2   : > { %v680_v28 = vrot.slane %v672_v21, %v2596_v43  ;;  %v687_v29 = vrot.slane %v673_v23, %v2596_v43  ;;  %v696_v30 = vrot.slane %v688_v24, %v2596_v43  ;;  %v703_v31 = vrot.slane %v689_v25, %v2596_v43 }
 0x2c3   : > { %v1020_v32 = vpack.c.bf16 %v944_v26, %v944_v26  ;;  %v1023_v33 = vpack.c.bf16 %v947_v27, %v947_v27  ;;  %v1021_v56 = vpack.c.bf16 %v945_v46, %v945_v46  ;;  %v1022_v63 = vpack.c.bf16 %v946_v61, %v946_v61 }
 0x2c4   : > { %v2019_v34 = vcombine.low %v680_v28, %v687_v29  ;;  %v2021_v35 = vcombine.high %v680_v28, %v687_v29  ;;  %v2023_v36 = vcombine.low %v696_v30, %v703_v31  ;;  %v2025_v38 = vcombine.high %v696_v30, %v703_v31 }
 0x2c5   : > { %v1029_v39 = vsel %vm1024_vm2, %v1020_v32, 0  ;;  %v1167_v40 = vsel %vm1024_vm2, %v1023_v33, 0  ;;  %v1075_v60 = vsel %vm1024_vm2, %v1021_v56, 0  ;;  %v1121_v2 = vsel %vm1024_vm2, %v1022_v63, 0 }
 0x2c6   : > { %v820_v41 = vrot.slane %v2019_v34, %v2594_v37  ;;  %v836_v42 = vrot.slane %v2021_v35, %v2594_v37  ;;  %v852_v44 = vrot.slane %v2023_v36, %v2594_v37  ;;  %v868_v45 = vrot.slane %v2025_v38, %v2594_v37  ;;  %2114 = vmatpush3.bf16.xpose.msra.mxu1 %v1029_v39 }
 0x2c7   : > { %2132 = vmatpush3.bf16.xpose.msra.mxu0 %v1167_v40  ;;  %2119 = vmatprep.subr.bf16.mxu1 %v2406_v8 }
 0x2c8   : > { %v876_v47 = vcombine.low %v820_v41, %v836_v42  ;;  %v908_v48 = vcombine.low %v852_v44, %v868_v45  ;;  %v877_v49 = vcombine.high %v820_v41, %v836_v42  ;;  %v909_v50 = vcombine.high %v852_v44, %v868_v45  ;;  %2143 = vmatprep.subr.bf16.mxu0 %v2406_v8 }
 0x2ca   : > { %v884_v51 = vrot.slane %v876_v47, %v2596_v43  ;;  %v916_v52 = vrot.slane %v908_v48, %v2596_v43  ;;  %v891_v53 = vrot.slane %v877_v49, %v2596_v43  ;;  %v923_v54 = vrot.slane %v909_v50, %v2596_v43 }
 0x2cc   : > { %v940_v55 = vcombine.low %v884_v51, %v916_v52  ;;  %v943_v57 = vcombine.high %v891_v53, %v923_v54  ;;  %v941_v62 = vcombine.high %v884_v51, %v916_v52  ;;  %v942_v3 = vcombine.low %v891_v53, %v923_v54 }
 0x2ce   : > { %v1016_v58 = vpack.c.bf16 %v940_v55, %v940_v55  ;;  %v1019_v59 = vpack.c.bf16 %v943_v57, %v943_v57  ;;  %v1017_v1 = vpack.c.bf16 %v941_v62, %v941_v62  ;;  %v1018_v4 = vpack.c.bf16 %v942_v3, %v942_v3 }
 0x2d0   : > { %2116 = vmatmul.mubr.msk.bf16.vlgmr.msra.gmra.mrb[4].mxu1 %vm1024_vm2, %v1016_v58  ;;  %2134 = vmatmul.mubr.msk.bf16.vlgmr.msra.gmra.mrb[0].mxu0 %vm1024_vm2, %v1019_v59 }
 0x2d1   : > { %2120 = vmatpush3.bf16.xpose.msra.mxu1 %v1075_v60  ;;  %2121 = vmatprep.mubr.msk.bf16.mxu1 %vm2407_vm1, %v2406_v8 }
 0x2d2   : > { %2125 = vmatprep.subr.bf16.mxu1 %v2406_v8  ;;  %2145 = vmatprep.mubr.msk.bf16.mxu0 %vm2407_vm1, %v2406_v8 }
 0x2d8   : > { %2122 = vmatmul.mubr.msk.bf16.vlgmr.msra.gmra.mrb[8].mxu1 %vm1024_vm2, %v1017_v1 }
 0x2d9   : > { %2126 = vmatpush3.bf16.xpose.msra.mxu1 %v1121_v2  ;;  %2127 = vmatprep.mubr.msk.bf16.mxu1 %vm2407_vm1, %v2406_v8 }
 0x2da   : > { %2137 = vmatprep.subr.bf16.mxu1 %v2406_v8 }
 0x2e0   : > { %2128 = vmatmul.mubr.msk.bf16.vlgmr.msra.gmra.mrb[12].mxu1 %vm1024_vm2, %v1018_v4 }
 0x2e1   : > { %2139 = vmatprep.mubr.msk.bf16.mxu1 %vm2407_vm1, %v2406_v8 }
 0x3a3   : > { %v1065_v5 = vpop.f32.mrb[4].mxu1  ;;  %v1203_v6 = vpop.f32.mrb[0].mxu0 }
 0x3a4   : > { %v2117_v7 = vpop.f32.mrb[5].mxu1  ;;  %v2135_v9 = vpop.f32.mrb[1].mxu0  ;;  %v1209_v10 = vsel %vm1024_vm2, %v1065_v5, -inf  ;;  %v1218_v20 = vsel %vm1024_vm2, %v1203_v6, -inf }
 0x3a5   : > { %v1206_v11 = vpop.f32.mrb[2].mxu0  ;;  %1210 = vmax.xlane.f32.xlu1 %v1209_v10  ;;  %v1068_v12 = vpop.f32.mrb[6].mxu1 }
 0x3a6   : > { %v2118_v13 = vpop.f32.mrb[7].mxu1  ;;  %v2136_v14 = vpop.f32.mrb[3].mxu0 }
 0x3ab   : > { %v1111_v15 = vpop.f32.mrb[8].mxu1 }
 0x3ac   : > { %v2123_v16 = vpop.f32.mrb[9].mxu1  ;;  %v1212_v17 = vsel %vm1024_vm2, %v1111_v15, -inf }
 0x3ad   : > { %1213 = vmax.xlane.f32.xlu0 %v1212_v17  ;;  %v1114_v18 = vpop.f32.mrb[10].mxu1 }
 0x3ae   : > { %v2124_v19 = vpop.f32.mrb[11].mxu1 }
 0x3b1   : > { %1219 = vmax.xlane.f32.xlu0 %v1218_v20 }
 0x3b3   : > { %v1157_v21 = vpop.f32.mrb[12].mxu1 }
 0x3b4   : > { %v2129_v23 = vpop.f32.mrb[13].mxu1  ;;  %v1215_v24 = vsel %vm1024_vm2, %v1157_v21, -inf }
 0x3b5   : > { %1216 = vmax.xlane.f32.xlu1 %v1215_v24  ;;  %v1160_v25 = vpop.f32.mrb[14].mxu1 }
 0x3b6   : > { %v2130_v26 = vpop.f32.mrb[15].mxu1 }
 0x3c6   : > { %596 = vrot.lane.b32.xlu1 %v2585_v22, %s2417_s26 }
 0x432   : > { %v1211_v27 = vpop.xlane.xlu1 %1210 }
 0x433   : > { %v1221_v28 = vsub.f32 %v1065_v5, %v1211_v27 }
 0x435   : > { %v1225_v29 = vmul.f32 1.442695, %v1221_v28 }
 0x437   : > { %2288 = vpow2.f32 %v1225_v29 }
 0x43a   : > { %v1214_v30 = vpop.xlane.xlu0 %1213 }
 0x43b   : > { %v1222_v31 = vsub.f32 %v1111_v15, %v1214_v30 }
 0x43d   : > { %v1227_v32 = vmul.f32 1.442695, %v1222_v31 }
 0x43e   : > { %v1220_v38 = vpop.xlane.xlu0 %1219 }
 0x43f   : > { %2290 = vpow2.f32 %v1227_v32  ;;  %v1224_v39 = vsub.f32 %v1203_v6, %v1220_v38 }
 0x441   : > { %v2289_v33 = vpop.eup %2288  ;;  %v1231_v41 = vmul.f32 1.442695, %v1224_v39 }
 0x442   : > { %v1233_v34 = vsel %vm1024_vm2, %v2289_v33, 0.0  ;;  %v1217_v40 = vpop.xlane.xlu1 %1216 }
 0x443   : > { %1234 = vadd.xlane.f32.xlu1 %v1233_v34  ;;  %v1223_v42 = vsub.f32 %v1157_v21, %v1217_v40  ;;  %2292 = vpow2.f32 %v1231_v41 }
 0x445   : > { %v1229_v44 = vmul.f32 1.442695, %v1223_v42 }
 0x446   : > { %v597_v48 = vpop.permute.xlu1 %596 }
 0x447   : > { %2294 = vpow2.f32 %v1229_v44 }
 0x449   : > { %v2291_v35 = vpop.eup %2290 }
 0x44a   : > { %v1236_v36 = vsel %vm1024_vm2, %v2291_v35, 0.0 }
 0x44b   : > { %1237 = vadd.xlane.f32.xlu0 %v1236_v36 }
 0x44d   : > { %v2662_v45 = vpop.eup %2292 }
 0x44e   : > { %v1242_v46 = vsel %vm1024_vm2, %v2662_v45, 0.0 }
 0x451   : > { %v2666_v47 = vpop.eup %2294 }
 0x454   : > { %602 = vrot.lane.b32.xlu1 %v2585_v22, %s2418_s27  ;;  %s2310_s27 = scalar_lea.vmem %s2818_s2, 512 }
 0x455   : > { %p2311_p11 = scmp.ne.s32.totalorder %s2818_s2, %s2310_s27 }
 0x457   : > { %p2312_p12 = pnand %p2311_p11, %p2538_p5 }
 0x458   : > { %605 = vrot.lane.b32.xlu1 %v2585_v22, %s2419_s28 }
 0x459   : > { %p2313_p13 = pneg %p2312_p12 }
 0x461   : > { %599 = vrot.lane.b32.xlu0 %v2585_v22, %s2420_s18  ;;  %v1239_v22 = vsel %vm1024_vm2, %v2666_v47, 0.0 }
 0x47c   : > { %1243 = vadd.xlane.f32.xlu1 %v1242_v46 }
 0x480   : > { %1240 = vadd.xlane.f32.xlu0 %v1239_v22 }
 0x4d0   : > { %v1235_v49 = vpop.xlane.xlu1 %1234 }
 0x4d1   : > { %2296 = vrcp.f32 %v1235_v49 }
 0x4d4   : > { %v603_v50 = vpop.permute.xlu1 %602 }
 0x4d5   : > { %v744_v53 = vcombine.low %v597_v48, %v603_v50  ;;  %v745_v54 = vcombine.high %v597_v48, %v603_v50 }
 0x4d7   : > { %v752_v60 = vrot.slane %v744_v53, %v2594_v37  ;;  %v759_v61 = vrot.slane %v745_v54, %v2594_v37  ;;  %v1460_v54 = vld [vmem:[%s2931_s3 + $0x8] sm:$0xf] }
 0x4d8   : > { %v1238_v51 = vpop.xlane.xlu0 %1237  ;;  %v606_v56 = vpop.permute.xlu1 %605 }
 0x4d9   : > { %2298 = vrcp.f32 %v1238_v51 }
 0x4db   : > { %v2297_v52 = vpop.eup %2296 }
 0x4dc   : > { %v1253_v55 = vmul.f32 %v2297_v52, %v2289_v33  ;;  %v600_v57 = vpop.permute.xlu0 %599 }
 0x4dd   : > { %v760_v58 = vcombine.low %v600_v57, %v606_v56  ;;  %v761_v59 = vcombine.high %v600_v57, %v606_v56 }
 0x4de   : > { %1257 = vst.msk [vmem:[%s2674_s25] sm:$0xff] %vm1024_vm2, %v1253_v55  ;;  %v1261_v39 = vpack.c.bf16 %v1253_v55, %v1253_v55  ;;  %v1461_v55 = vld [vmem:[%s2931_s3 + $0xc] sm:$0xf] }
 0x4df   : > { %v768_v62 = vrot.slane %v760_v58, %v2594_v37  ;;  %v775_v63 = vrot.slane %v761_v59, %v2594_v37 }
 0x4e1   : > { %v776_v1 = vcombine.low %v752_v60, %v768_v62  ;;  %v777_v2 = vcombine.high %v752_v60, %v768_v62  ;;  %v792_v3 = vcombine.low %v759_v61, %v775_v63  ;;  %v793_v4 = vcombine.high %v759_v61, %v775_v63 }
 0x4e2   : > { %v1558_v62 = vsel %vm1272_vm3, %v1460_v54, 0  ;;  %v1604_v63 = vsel %vm1272_vm3, %v1461_v55, 0  ;;  %v2043_v55 = vld [vmem:[%s2910_s8] ss:$0 sm:$0xff] }
 0x4e3   : > { %v2299_v5 = vpop.eup %2298  ;;  %v784_v6 = vrot.slane %v776_v1, %v2596_v43  ;;  %v791_v7 = vrot.slane %v777_v2, %v2596_v43  ;;  %v800_v9 = vrot.slane %v792_v3, %v2596_v43  ;;  %v807_v10 = vrot.slane %v793_v4, %v2596_v43 }
 0x4e4   : > { %v1254_v11 = vmul.f32 %v2299_v5, %v2291_v35 }
 0x4e5   : > { %v948_v12 = vcombine.low %v784_v6, %v791_v7  ;;  %v2027_v13 = vcombine.high %v784_v6, %v791_v7  ;;  %v964_v14 = vcombine.low %v800_v9, %v807_v10  ;;  %v2028_v15 = vcombine.high %v800_v9, %v807_v10 }
 0x4e6   : > { %1258 = vst.msk [vmem:[%s2674_s25 + $0x8] sm:$0xff] %vm1024_vm2, %v1254_v11  ;;  %v1262_v40 = vpack.c.bf16 %v1254_v11, %v1254_v11 }
 0x4e7   : > { %v955_v16 = vrot.slane %v948_v12, %v2594_v37  ;;  %v963_v17 = vrot.slane %v2027_v13, %v2594_v37  ;;  %v971_v18 = vrot.slane %v964_v14, %v2594_v37  ;;  %v979_v19 = vrot.slane %v2028_v15, %v2594_v37 }
 0x4e9   : > { %v980_v20 = vcombine.low %v955_v16, %v963_v17  ;;  %v996_v21 = vcombine.low %v971_v18, %v979_v19  ;;  %v981_v23 = vcombine.high %v955_v16, %v963_v17  ;;  %v997_v24 = vcombine.high %v971_v18, %v979_v19 }
 0x4eb   : > { %v988_v25 = vrot.slane %v980_v20, %v2596_v43  ;;  %v1004_v26 = vrot.slane %v996_v21, %v2596_v43  ;;  %v995_v27 = vrot.slane %v981_v23, %v2596_v43  ;;  %v1011_v28 = vrot.slane %v997_v24, %v2596_v43 }
 0x4ed   : > { %v1012_v29 = vcombine.low %v988_v25, %v1004_v26  ;;  %v1013_v30 = vcombine.high %v988_v25, %v1004_v26  ;;  %v1014_v31 = vcombine.low %v995_v27, %v1011_v28  ;;  %v1015_v32 = vcombine.high %v995_v27, %v1011_v28 }
 0x4ef   : > { %v1265_v33 = vpack.c.bf16 %v1012_v29, %v1012_v29  ;;  %v1266_v34 = vpack.c.bf16 %v1013_v30, %v1013_v30  ;;  %v1267_v36 = vpack.c.bf16 %v1014_v31, %v1014_v31  ;;  %v1268_v38 = vpack.c.bf16 %v1015_v32, %v1015_v32 }
 0x4f1   : > { %v1274_v37 = vsel %vm1272_vm3, %v1265_v33, 0  ;;  %v1320_v35 = vsel %vm1272_vm3, %v1266_v34, 0  ;;  %v1366_v43 = vsel %vm1272_vm3, %v1267_v36, 0  ;;  %v1412_v41 = vsel %vm1272_vm3, %v1268_v38, 0  ;;  %v2041_v38 = vld [vmem:[%s2932_s4] ss:$0 sm:$0xff] }
 0x4f2   : > { %2138 = vmatpush3.bf16.msra.mxu1 %v1274_v37  ;;  %2144 = vmatpush3.bf16.msra.mxu0 %v1320_v35 }
 0x4f3   : > { %2149 = vmatprep.subr.bf16.mxu1 %v2406_v8  ;;  %2155 = vmatprep.subr.bf16.mxu0 %v2406_v8 }
 0x4f5   : > { %2140 = vmatmul.mubr.msk.bf16.vlgmr.msra.gmra.mrb[16].mxu1 %vm1024_vm2, %v1261_v39  ;;  %2146 = vmatmul.mubr.msk.bf16.vlgmr.msra.gmra.mrb[4].mxu0 %vm1024_vm2, %v1262_v40 }
 0x4f6   : > { %2150 = vmatpush3.bf16.msra.mxu1 %v1366_v43  ;;  %2156 = vmatpush3.bf16.msra.mxu0 %v1412_v41 }
 0x4f7   : > { %2157 = vmatprep.mubr.msk.bf16.mxu0 %vm2407_vm1, %v2406_v8  ;;  %2151 = vmatprep.mubr.msk.bf16.mxu1 %vm2407_vm1, %v2406_v8 }
 0x4f8   : > { %2161 = vmatprep.subr.bf16.mxu1 %v2406_v8  ;;  %2167 = vmatprep.subr.bf16.mxu0 %v2406_v8 }
 0x509   : > { %v1244_v42 = vpop.xlane.xlu1 %1243 }
 0x50a   : > { %2300 = vrcp.f32 %v1244_v42 }
 0x50d   : > { %v1241_v44 = vpop.xlane.xlu0 %1240 }
 0x50e   : > { %2302 = vrcp.f32 %v1241_v44 }
 0x514   : > { %v2301_v46 = vpop.eup %2300 }
 0x515   : > { %v1256_v22 = vmul.f32 %v2301_v46, %v2662_v45  ;;  %v1458_v45 = vld [vmem:[%s2931_s3] sm:$0xf] }
 0x516   : > { %v1466_v52 = vsel %vm1272_vm3, %v1458_v45, 0 }
 0x517   : > { %v1264_v48 = vpack.c.bf16 %v1256_v22, %v1256_v22  ;;  %1260 = vst.msk [vmem:[%s2674_s25 + $0x18] sm:$0xff] %vm1024_vm2, %v1256_v22 }
 0x518   : > { %v2303_v49 = vpop.eup %2302 }
 0x519   : > { %v1255_v50 = vmul.f32 %v2303_v49, %v2666_v47  ;;  %2158 = vmatmul.mubr.msk.bf16.vlgmr.msra.gmra.mrb[8].mxu0 %vm1024_vm2, %v1264_v48  ;;  %v1459_v47 = vld [vmem:[%s2931_s3 + $0x4] sm:$0xf]  ;;  %s2314_s3 = sshll.u32 %s2421_s1, 4  ;;  %s2315_s3 = int_to_ptr.vmem [resolvable:$false] %s2314_s3 }
 0x51a   : > { %2169 = vmatprep.mubr.msk.bf16.mxu0 %vm2407_vm1, %v2406_v8  ;;  %v1512_v53 = vsel %vm1272_vm3, %v1459_v47, 0  ;;  %p2317_p0 = scmp.lt.s32.totalorder %s2818_s2, %s2315_s3 }
 0x51b   : > { %v1263_v51 = vpack.c.bf16 %v1255_v50, %v1255_v50  ;;  %1259 = vst.msk [vmem:[%s2674_s25 + $0x10] sm:$0xff] %vm1024_vm2, %v1255_v50  ;;  %2168 = vmatpush3.bf16.msra.mxu0 %v1512_v53  ;;  %v2276_v50 = vld [vmem:[%s2911_s9] sm:$0xff]   ;;  %s2316_s25 = scalar_lea.vmem %s2315_s3, 1024 }
 0x51c   : > { %2179 = vmatprep.subr.bf16.mxu0 %v2406_v8  ;;  %v2042_v53 = vld [vmem:[%s2909_s7] ss:$0 sm:$0xff]  ;;  %p2318_p1 = scmp.lt.s32.totalorder %s2316_s25, %s2310_s27 }
 0x51d   : > { %2152 = vmatmul.mubr.msk.bf16.vlgmr.msra.gmra.mrb[20].mxu1 %vm1024_vm2, %v1263_v51 }
 0x51e   : > { %2163 = vmatprep.mubr.msk.bf16.mxu1 %vm2407_vm1, %v2406_v8  ;;  %2162 = vmatpush3.bf16.msra.mxu1 %v1466_v52  ;;  %p2319_p2 = por %p2318_p1, %p2317_p0 }
 0x51f   : > { %2173 = vmatprep.subr.bf16.mxu1 %v2406_v8 }
 0x520   : > { %p2320_p3 = pnand %p2319_p2, %p2313_p13 }
 0x5c8   : > { %v1310_v56 = vpop.f32.mrb[16].mxu1  ;;  %v1356_v57 = vpop.f32.mrb[4].mxu0 }
 0x5c9   : > { %v1454_v58 = vpack.c.bf16 %v1310_v56, %v1310_v56  ;;  %v1455_v59 = vpack.c.bf16 %v1356_v57, %v1356_v57  ;;  %v2141_v60 = vpop.f32.mrb[17].mxu1  ;;  %v2147_v61 = vpop.f32.mrb[5].mxu0 }
 0x5ca   : > { %v1313_v1 = vpop.f32.mrb[18].mxu1  ;;  %v1359_v2 = vpop.f32.mrb[6].mxu0  ;;  %v2279_v60 = vld [vmem:[%s2913_s11 + $0x8] sm:$0xff]   ;;  %v2280_v61 = vld [vmem:[%s2913_s11 + $0x10] sm:$0xff]  }
 0x5cb   : > { %v2142_v3 = vpop.f32.mrb[19].mxu1  ;;  %v2148_v4 = vpop.f32.mrb[7].mxu0  ;;  %2164 = vmatmul.mubr.msk.bf16.vlgmr.msra.gmra.mrb[24].mxu1 %vm1024_vm2, %v1454_v58  ;;  %2170 = vmatmul.mubr.msk.bf16.vlgmr.msra.gmra.mrb[12].mxu0 %vm1024_vm2, %v1455_v59  ;;  %v2278_v59 = vld [vmem:[%s2913_s11] sm:$0xff]   ;;  %v2283_v1 = vld [vmem:[%s2913_s11 + $0x28] sm:$0xff]   ;;  %v2284_v2 = vld [vmem:[%s2913_s11 + $0x30] sm:$0xff]  }
 0x5cc   : > { %2174 = vmatpush3.bf16.msra.mxu1 %v1558_v62  ;;  %2180 = vmatpush3.bf16.msra.mxu0 %v1604_v63  ;;  %v2281_v62 = vld [vmem:[%s2913_s11 + $0x18] sm:$0xff]   ;;  %v2282_v63 = vld [vmem:[%s2913_s11 + $0x20] sm:$0xff]  }
 0x5cd   : > { %2181 = vmatprep.mubr.msk.bf16.mxu0 %vm2407_vm1, %v2406_v8  ;;  %2175 = vmatprep.mubr.msk.bf16.mxu1 %vm2407_vm1, %v2406_v8  ;;  %v2285_v3 = vld [vmem:[%s2913_s11 + $0x38] sm:$0xff]   ;;  %v2044_v4 = vld [vmem:[%s2912_s10] ss:$0 sm:$0xff] }
 0x5ce   : > { %2185 = vmatprep.subr.bf16.mxu1 %v2406_v8  ;;  %2193 = vmatprep.subr.bf16.mxu0 %v2406_v8 }
 0x5ec   : > { %v1448_v5 = vpop.f32.mrb[8].mxu0 }
 0x5ed   : > { %v1457_v6 = vpack.c.bf16 %v1448_v5, %v1448_v5  ;;  %v2159_v7 = vpop.f32.mrb[9].mxu0 }
 0x5ee   : > { %v1451_v9 = vpop.f32.mrb[10].mxu0 }
 0x5ef   : > { %v2160_v10 = vpop.f32.mrb[11].mxu0  ;;  %2182 = vmatmul.mubr.msk.bf16.vlgmr.msra.gmra.mrb[16].mxu0 %vm1024_vm2, %v1457_v6 }
 0x5f0   : > { %v1402_v11 = vpop.f32.mrb[20].mxu1  ;;  %2209 = vmatprep.mubr.msk.bf16.mxu0 %vm2407_vm1, %v2406_v8  ;;  %2194 = vmatpush3.bf16.msra.mxu0 %v2278_v59 }
 0x5f1   : > { %v1456_v12 = vpack.c.bf16 %v1402_v11, %v1402_v11  ;;  %v2153_v13 = vpop.f32.mrb[21].mxu1  ;;  %2195 = vmatprep.subr.bf16.mxu0 %v2406_v8 }
 0x5f2   : > { %v1405_v14 = vpop.f32.mrb[22].mxu1 }
 0x5f3   : > { %v2154_v15 = vpop.f32.mrb[23].mxu1  ;;  %2176 = vmatmul.mubr.msk.bf16.vlgmr.msra.gmra.mrb[28].mxu1 %vm1024_vm2, %v1456_v12 }
 0x5f4   : > { %2189 = vmatprep.mubr.msk.bf16.mxu1 %vm2407_vm1, %v2406_v8  ;;  %2186 = vmatpush3.bf16.msra.mxu1 %v2276_v50 }
 0x5f5   : > { %2187 = vmatprep.subr.bf16.mxu1 %v2406_v8  ;;  %2196 = vmatpush3.bf16.msra.mxu0 %v2279_v60 }
 0x5f6   : > { %2197 = vmatprep.subr.bf16.mxu0 %v2406_v8 }
 0x5f9   : > { %2198 = vmatpush3.bf16.msra.mxu0 %v2280_v61 }
 0x5fa   : > { %2199 = vmatprep.subr.bf16.mxu0 %v2406_v8 }
 0x5fd   : > { %2200 = vmatpush3.bf16.msra.mxu0 %v2281_v62 }
 0x5fe   : > { %2201 = vmatprep.subr.bf16.mxu0 %v2406_v8 }
 0x601   : > { %2202 = vmatpush3.bf16.msra.mxu0 %v2282_v63 }
 0x602   : > { %2203 = vmatprep.subr.bf16.mxu0 %v2406_v8 }
 0x605   : > { %2204 = vmatpush3.bf16.msra.mxu0 %v2283_v1 }
 0x606   : > { %2205 = vmatprep.subr.bf16.mxu0 %v2406_v8 }
 0x609   : > { %2206 = vmatpush3.bf16.msra.mxu0 %v2284_v2 }
 0x60a   : > { %2207 = vmatprep.subr.bf16.mxu0 %v2406_v8 }
 0x60d   : > { %2208 = vmatpush3.bf16.msra.mxu0 %v2285_v3 }
 0x69e   : > { %v1502_v16 = vpop.f32.mrb[24].mxu1  ;;  %v1548_v17 = vpop.f32.mrb[12].mxu0 }
 0x69f   : > { %v1646_v18 = vsel %vm478_vm0, %v1502_v16, 0.0  ;;  %v1647_v19 = vsel %vm478_vm0, %v1548_v17, 0.0  ;;  %v2165_v20 = vpop.f32.mrb[25].mxu1  ;;  %v2171_v21 = vpop.f32.mrb[13].mxu0 }
 0x6a0   : > { %v1648_v23 = vadd.f32 %v1647_v19, %v1646_v18  ;;  %v1505_v24 = vpop.f32.mrb[26].mxu1  ;;  %v1551_v25 = vpop.f32.mrb[14].mxu0 }
 0x6a1   : > { %v2166_v26 = vpop.f32.mrb[27].mxu1  ;;  %v2172_v27 = vpop.f32.mrb[15].mxu0 }
 0x6c2   : > { %v1640_v28 = vpop.f32.mrb[16].mxu0 }
 0x6c3   : > { %v2183_v29 = vpop.f32.mrb[17].mxu0  ;;  %v1651_v36 = vsel %vm478_vm0, %v1640_v28, 0.0 }
 0x6c4   : > { %v1643_v30 = vpop.f32.mrb[18].mxu0 }
 0x6c5   : > { %v2184_v31 = vpop.f32.mrb[19].mxu0 }
 0x6c6   : > { %v1594_v32 = vpop.f32.mrb[28].mxu1 }
 0x6c7   : > { %v1649_v33 = vsel %vm478_vm0, %v1594_v32, 0.0  ;;  %v2177_v34 = vpop.f32.mrb[29].mxu1 }
 0x6c8   : > { %v1650_v37 = vadd.f32 %v1649_v33, %v1648_v23  ;;  %v1597_v35 = vpop.f32.mrb[30].mxu1 }
 0x6c9   : > { %v2178_v39 = vpop.f32.mrb[31].mxu1 }
 0x6ca   : > { %v1652_v40 = vadd.f32 %v1651_v36, %v1650_v37 }
 0x6cc   : > { %v1660_v43 = vadd.f32 %v2041_v38, %v1652_v40 }
 0x6ce   : > { %v2762_v41 = vadd.f32 %v1660_v43, %v2553_v0  ;;  %v2277_v0 = vld [vmem:[%s2911_s9 + $0x8] sm:$0xff]  }
 0x6cf   : > { %2188 = vmatpush3.bf16.msra.mxu1 %v2277_v0 }
 0x6d0   : > { %v1664_v42 = vsel %vm478_vm0, %v2762_v41, 0.0 }
 0x6d1   : > { %1665 = vadd.xlane.f32.xlu0 %v1664_v42 }
 0x75e   : > { %v1666_v44 = vpop.xlane.xlu0 %1665 }
 0x75f   : > { %v1667_v46 = vmul.f32 0.03125, %v1666_v44 }
 0x761   : > { %v1668_v22 = vsub.f32 %v2762_v41, %v1667_v46 }
 0x763   : > { %v1669_v48 = vmul.f32 %v1668_v22, %v1668_v22 }
 0x765   : > { %v1670_v49 = vsel %vm478_vm0, %v1669_v48, 0.0 }
 0x766   : > { %1671 = vadd.xlane.f32.xlu0 %v1670_v49 }
 0x7f3   : > { %v1672_v51 = vpop.xlane.xlu0 %1671 }
 0x7f4   : > { %v1673_v45 = vmul.f32 0.03125, %v1672_v51 }
 0x7f6   : > { %v1674_v47 = vadd.f32 1e-05, %v1673_v45 }
 0x7f8   : > { %2304 = vrsqrt.f32 %v1674_v47 }
 0x802   : > { %v2305_v52 = vpop.eup %2304 }
 0x803   : > { %v1676_v54 = vmul.f32 %v2305_v52, %v1668_v22 }
 0x805   : > { %v1683_v56 = vmul.f32 %v2042_v53, %v1676_v54 }
 0x807   : > { %v1690_v57 = vadd.f32 %v2043_v55, %v1683_v56 }
 0x809   : > { %v1691_v58 = vpack.c.bf16 %v1690_v57, %v1690_v57 }
 0x80b   : > { %2190 = vmatmul.mubr.msk.bf16.vlgmr.msra.gmra.mrb[32].mxu1 %vm478_vm0, %v1691_v58 }
 0x8de   : > { %v1752_v5 = vpop.f32.mrb[32].mxu1 }
 0x8df   : > { %v1753_v6 = vadd.f32 %v2044_v4, %v1752_v5  ;;  %v2191_v7 = vpop.f32.mrb[33].mxu1 }
 0x8e0   : > { %v1755_v9 = vpop.f32.mrb[34].mxu1 }
 0x8e1   : > { %v2048_v10 = vmul.f32 -1.702, %v1753_v6  ;;  %v2192_v11 = vpop.f32.mrb[35].mxu1 }
 0x8e3   : > { %v1760_v12 = vmul.f32 1.442695, %v2048_v10 }
 0x8e5   : > { %2306 = vpow2.f32 %v1760_v12 }
 0x8ef   : > { %v2307_v8 = vpop.eup %2306 }
 0x8f0   : > { %v1762_v13 = vadd.f32 1.0, %v2307_v8 }
 0x8f2   : > { %2308 = vrcp.f32 %v1762_v13 }
 0x8fc   : > { %v2309_v14 = vpop.eup %2308 }
 0x8fd   : > { %v1765_v15 = vmul.f32 %v2309_v14, %v1753_v6 }
 0x8ff   : > { %v1766_v16 = vpack.c.bf16 %v1765_v15, %v1765_v15 }
 0x901   : > { %2210 = vmatmul.mubr.bf16.vlgmr.msra.gmra.mrb[20].mxu0 %v1766_v16 }
 0x902   : > { %2323 = shalt.err (!%p2320_p3)
}
 0x903   : > { %s2324_s0 = scalar_lea.hbm %s2823_s21, 512  ;;  %s2328_s1 = scalar_lea.hbm %s2916_s14, 1024 }
 0x904   : > { %p2325_p4 = scmp.ne.s32.totalorder %s2823_s21, %s2324_s0  ;;  %p2329_p9 = scmp.lt.u32.totalorder %s2823_s21, %s2916_s14 }
 0x905   : > { %p2330_p10 = scmp.lt.u32.totalorder %s2328_s1, %s2324_s0  ;;  %p2332_p12 = scmp.lt.u32.totalorder %s2324_s0, %s2823_s21 }
 0x906   : > { %p2326_p7 = pnand %p2325_p4, %p2538_p5 }
 0x907   : > { %p2331_p11 = por %p2330_p10, %p2329_p9 }
 0x908   : > { %p2327_p8 = pneg %p2326_p7 }
 0x909   : > { %p2333_p13 = por %p2332_p12, %p2331_p11 }
 0x90b   : > { %p2334_p0 = pnand %p2333_p13, %p2327_p8 }
 0x90d   : > { %2337 = shalt.err (!%p2334_p0)
}
 0x90e   : > { %s2422_s27 = smov 128   ;;  %s2423_s25 = smov 8   ;;  %v2049_v17 = vld [vmem:[%s2914_s12] ss:$0 sm:$0xff] }
 0x90f   : > { %s2933_s28 = scalar_lea.sflag [#allocation5], %s2671_s20  ;;  %s2010_s26 = sshll.u32 %s2671_s20, 3 }
 0x910   : > { %2214 = dma.vmem_to_hbm [thread:$0]  (%p2538_p5), %s2818_s2, 512, %s2823_s21, %s2933_s28, %s2422_s27, %s2422_s27, %s2423_s25  }
 0x911   : > { %s2060_s0 = sshll.u32 %s2521_s17, 7  ;;  %s462_s3 = scalar_lea.vmem [#allocation2], %s2010_s26 }
 0x912   : > { %s1899_s4 = sshll.u32 %s462_s3, 4  ;;  %s2858_s2 = scalar_lea.hbm %s2915_s13, %s2060_s0  ;;  %s2860_s4 = int_to_ptr.vmem [resolvable:$true] %s1899_s4 }
 0x913   : > { %s1881_s17 = scalar_lea.sflag [#allocation3], %s2671_s20  ;;  %s2338_s21 = scalar_lea.vmem %s2860_s4, 128 }
 0x914   : > { %p2339_p1 = scmp.ne.s32.totalorder %s2860_s4, %s2338_s21  ;;  %s2424_s27 = smov [#allocation2]  }
 0x915   : > { %s2342_s25 = sshll.u32 %s2424_s27, 4  ;;  %s2343_s25 = int_to_ptr.vmem [resolvable:$false] %s2342_s25 }
 0x916   : > { %p2340_p2 = pnand %p2339_p1, %p2538_p5  ;;  %s2344_s28 = scalar_lea.vmem %s2343_s25, 256 }
 0x917   : > { %p2345_p4 = scmp.lt.s32.totalorder %s2860_s4, %s2343_s25  ;;  %p2346_p7 = scmp.lt.s32.totalorder %s2344_s28, %s2338_s21 }
 0x918   : > { %p2341_p3 = pneg %p2340_p2 }
 0x919   : > { %p2347_p8 = por %p2346_p7, %p2345_p4 }
 0x91b   : > { %p2348_p9 = pnand %p2347_p8, %p2341_p3 }
 0x9d4   : > { %v1872_v18 = vpop.f32.mrb[20].mxu0 }
 0x9d5   : > { %v1873_v19 = vadd.f32 %v2049_v17, %v1872_v18  ;;  %v2211_v20 = vpop.f32.mrb[21].mxu0 }
 0x9d6   : > { %v1875_v21 = vpop.f32.mrb[22].mxu0 }
 0x9d7   : > { %v1878_v23 = vadd.f32 %v1873_v19, %v2762_v41  ;;  %v2212_v24 = vpop.f32.mrb[23].mxu0 }
 0x9d9   : > { %1879 = vst.msk [vmem:[%s462_s3] sm:$0xff] %vm478_vm0, %v1878_v23 }
 0x9da   : > { %2351 = shalt.err (!%p2348_p9)
}
 0x9db   : > { %s2352_s5 = scalar_lea.hbm %s2858_s2, 128  ;;  %s2356_s26 = scalar_lea.hbm %s2915_s13, 256 }
 0x9dc   : > { %p2353_p10 = scmp.ne.s32.totalorder %s2858_s2, %s2352_s5  ;;  %p2357_p13 = scmp.lt.u32.totalorder %s2858_s2, %s2915_s13 }
 0x9dd   : > { %p2358_p0 = scmp.lt.u32.totalorder %s2356_s26, %s2352_s5  ;;  %p2360_p2 = scmp.lt.u32.totalorder %s2352_s5, %s2858_s2 }
 0x9de   : > { %p2354_p11 = pnand %p2353_p10, %p2538_p5 }
 0x9df   : > { %p2359_p1 = por %p2358_p0, %p2357_p13 }
 0x9e0   : > { %p2355_p12 = pneg %p2354_p11 }
 0x9e1   : > { %p2361_p3 = por %p2360_p2, %p2359_p1 }
 0x9e3   : > { %p2362_p4 = pnand %p2361_p3, %p2355_p12 }
 0x9e5   : > { %2365 = shalt.err (!%p2362_p4)
}
 0x9e6   : > { %2213 = dma.vmem_to_hbm [thread:$0]  (%p2538_p5), %s2860_s4, 128, %s2858_s2, %s1881_s17  }
 0x9e7 PF: > { %p2224_p7 = scmp.ge.s32.totalorder %s2404_s16, 2  ;;  %s1927_s0 = sand.u32 1, %s2392_s29  }
 0x9e8   : > { %s1928_s3 = scalar_lea.sflag [#allocation3], %s1927_s0 }
 0x9e9   : > { %p2218_p8 = pnand %p2224_p7, %p2542_p6 }
 0x9eb   : > { %2383 = dma.done.wait (!%p2218_p8), %s1928_s3, 128  }
 0x9ec   : > { %2385 = vsyncadd (!%p2218_p8), %s1928_s3, 4294967168  ;;  %s1937_s21 = scalar_lea.sflag [#allocation5], %s1927_s0 }
 0x9ed   : > { %2387 = dma.done.wait (!%p2218_p8), %s1937_s21, 512  }
 0x9ee   : > { %2389 = vsyncadd (!%p2218_p8), %s1937_s21, 4294966784  ;;  %p28_p5 = scmp.ge.s32.totalorder %s2525_s19, 4   ;;  %s2934_s29 = smov %s2396_s30 }
 0x9ef   : > { %s2935_s30 = smov %s2400_s15  ;;  %s2936_s15 = smov %s2536_s22 }
 0x9f0   : > { %s2937_s16 = smov %s2525_s19  ;;  %30 = sbr.rel (!%p28_p5) target bundleno = 13 (0xd), region = 124 }
 0x9f7   :  { %1942 = vsyncpa [#allocation3], 1 }
 0x9f8   :  { %1944 = vsyncpa [#allocation3 + $0x1], 1 }
 0x9f9   :  { %1945 = vsyncpa [#allocation5], 1 }
 0x9fa   :  { %1947 = vsyncpa [#allocation5 + $0x1], 1 }

</bundles_post_ra>
